<compile_context>
chip_gen: v6e
topology: v6e:2x2x1
jax: 0.10.0
libtpu: 0.0.40
codegen_flags: <defaults>
</compile_context>

<pallas_src>
import functools
import math

import jax
import jax.numpy as jnp
from jax.experimental import pallas as pl
from jax.experimental.pallas import tpu as pltpu

# 48 MiB scoped VMEM: fits v7x's 64 MiB physical VMEM; raise toward ~100 MiB on
# v5e/v6e (128 MiB physical) for even larger tiles.
_VMEM_LIMIT = 48 * 1024 * 1024
_EPS = 1e-5


# ----------------------------------------------------------------------------
# Kernels
# ----------------------------------------------------------------------------
def _conv_stats_kernel(x_ref, w_ref, scale_ref, shift_ref, raw_ref, stats_ref,
                       *, apply_act):
    """3x3 'same' conv on rows [r*TH, r*TH+TH) of image i, + BN stat partials.

    x_ref     : (1, H, W, Cin)   whole (unpadded) image i; block index is
                                 invariant over the inner row axis, so it is
                                 DMA'd once per image.
    w_ref     : (9*Cin, Cout)    bf16 conv taps, tap t = 3*dy + dx.
    scale_ref : (1, Cin) f32     pre-activation BN scale (used iff apply_act).
    shift_ref : (1, Cin) f32     pre-activation BN shift (used iff apply_act).
    raw_ref   : (1, TH, W, Cout) bf16 raw (pre-BN) conv output tile.
    stats_ref : (1, 2, Cout) f32 per-image [sum, sum_sq], accumulated across r.

    If apply_act: the input tile is y = relu(x*scale + shift) (fused BN+ReLU of
    the previous conv).  The 'same' halo is built in-kernel: clamped top/bottom
    rows are zero-masked AFTER the activation (== zero-padding the activation),
    and zero columns are concatenated for the left/right halo.
    """
    r = pl.program_id(1)
    _, H, W, cin = x_ref.shape
    _, TH, _, cout = raw_ref.shape

    row0 = pl.multiple_of(r * TH, TH)

    mid = x_ref[0, pl.ds(row0, TH), :, :]                          # (TH, W, Cin)
    top = x_ref[0, pl.ds(jnp.maximum(row0 - 1, 0), 1), :, :]       # (1, W, Cin)
    bot = x_ref[0, pl.ds(jnp.minimum(row0 + TH, H - 1), 1), :, :]  # (1, W, Cin)

    def prep(v):
        v = v.astype(jnp.float32)
        if apply_act:
            v = jnp.maximum(v * scale_ref[...].reshape(1, 1, cin)
                            + shift_ref[...].reshape(1, 1, cin), 0.0)
        return v.astype(jnp.bfloat16)

    # Boundary rows become zeros of the *activation* (mask after prep).
    top_ok = jnp.where(row0 > 0, 1.0, 0.0).astype(jnp.bfloat16)
    bot_ok = jnp.where(row0 + TH < H, 1.0, 0.0).astype(jnp.bfloat16)
    x = jnp.concatenate(
        [prep(top) * top_ok, prep(mid), prep(bot) * bot_ok], axis=0)  # (TH+2,W,Cin)

    zcol = jnp.zeros((TH + 2, 1, cin), jnp.bfloat16)
    xpad = jnp.concatenate([zcol, x, zcol], axis=1)                # (TH+2,W+2,Cin)

    # im2col: 9 shifted views concatenated along channels -> one MXU matmul
    # with contraction depth K = 9*Cin, bf16 inputs, f32 accumulation.
    taps = []
    for t in range(9):
        dy, dx = divmod(t, 3)
        taps.append(xpad[dy:dy + TH, dx:dx + W, :].reshape(TH * W, cin))
    patch = jnp.concatenate(taps, axis=-1)                         # (TH*W, 9*Cin)

    acc = jnp.dot(patch, w_ref[...], preferred_element_type=jnp.float32)

    # Partial BN statistics from the f32 accumulator, accumulated into the
    # resident per-image stats block (row axis is sequential / "arbitrary").
    s1 = jnp.sum(acc, axis=0, keepdims=True)                       # (1, Cout)
    s2 = jnp.sum(acc * acc, axis=0, keepdims=True)                 # (1, Cout)
    part = jnp.concatenate([s1, s2], axis=0).reshape(1, 2, cout)

    @pl.when(r == 0)
    def _():
        stats_ref[...] = jnp.zeros_like(stats_ref)

    stats_ref[...] += part

    raw_ref[...] = acc.reshape(1, TH, W, cout).astype(raw_ref.dtype)


def _bn_relu_pool_kernel(raw_ref, scale_ref, shift_ref, o_ref):
    """y = relu(raw*scale + shift) fused with a 2x2 / stride-2 max pool.

    raw_ref : (1, TH, W, C) bf16      o_ref : (1, TH//2, W//2, C) f32
    Column pooling uses a full-tile load + reshape(TH, W//2, 2, C) + max
    (no strided sublane loads).
    """
    _, TH, W, c = raw_ref.shape
    scale = scale_ref[...].reshape(1, 1, c)
    shift = shift_ref[...].reshape(1, 1, c)

    a = raw_ref[...][0].astype(jnp.float32)                        # (TH, W, C)
    a = jnp.maximum(a * scale + shift, 0.0)

    a = a.reshape(TH, W // 2, 2, c)
    colmax = jnp.maximum(a[:, :, 0, :], a[:, :, 1, :])             # (TH, W/2, C)
    rm = colmax.reshape(TH // 2, 2, W // 2, c)
    out = jnp.maximum(rm[:, 0], rm[:, 1])                          # (TH/2, W/2, C)
    o_ref[...] = out.reshape(1, TH // 2, W // 2, c).astype(o_ref.dtype)


# ----------------------------------------------------------------------------
# Wrappers
# ----------------------------------------------------------------------------
def _pick_tile_h(h, w, c, *, target_bytes=4 << 20):
    """Largest even divisor of h whose f32 (tile_h, w, c) tile fits the budget.

    Big tiles amortize the ~0.35us per-grid-step overhead and give the MXU a
    large M = tile_h * W (>= 256 whenever the image allows).
    """
    for th in range(h, 1, -1):
        if h % th == 0 and th % 2 == 0 and th * w * c * 4 <= target_bytes:
            return th
    return 2


def _conv_bn_fused(x, w_mat, scale_in, shift_in, cout, tile_h, apply_act):
    """Tiled 3x3 'same' conv (+optional fused input BN/ReLU) + BN stat sums."""
    n, h, w, cin = x.shape
    rt = h // tile_h
    kernel = functools.partial(_conv_stats_kernel, apply_act=apply_act)
    return pl.pallas_call(
        kernel,
        grid=(n, rt),
        in_specs=[
            pl.BlockSpec((1, h, w, cin), lambda i, r: (i, 0, 0, 0)),
            pl.BlockSpec(w_mat.shape, lambda i, r: (0, 0)),
            pl.BlockSpec((1, cin), lambda i, r: (0, 0)),
            pl.BlockSpec((1, cin), lambda i, r: (0, 0)),
        ],
        out_specs=(
            pl.BlockSpec((1, tile_h, w, cout), lambda i, r: (i, r, 0, 0)),
            pl.BlockSpec((1, 2, cout), lambda i, r: (i, 0, 0)),
        ),
        out_shape=(
            jax.ShapeDtypeStruct((n, h, w, cout), jnp.bfloat16),
            jax.ShapeDtypeStruct((n, 2, cout), jnp.float32),
        ),
        compiler_params=pltpu.CompilerParams(
            # batch axis -> megacore; row axis sequential (whole-image input
            # block is DMA'd once per image; stats block stays resident).
            dimension_semantics=("parallel", "arbitrary"),
            vmem_limit_bytes=_VMEM_LIMIT,
        ),
    )(x, w_mat, scale_in, shift_in)


def _bn_scale_shift(stats, gamma, beta, count, eps=_EPS):
    """Fold gamma/beta into a per-channel (scale, shift) from [sum, sum_sq].

    TODO(synk): for production-sized N*H*W use a mean-centered / Welford-style
    combine; E[x^2]-E[x]^2 in f32 can lose precision for huge counts.
    """
    s = jnp.sum(stats, axis=0)                                     # (2, C)
    mean = s[0] / count
    var = jnp.maximum(s[1] / count - mean * mean, 0.0)
    scale = gamma * jax.lax.rsqrt(var + eps)
    shift = beta - mean * scale
    c = scale.shape[-1]
    return scale.reshape(1, c), shift.reshape(1, c)


def _bn_relu_pool(raw, scale, shift, tile_h):
    n, h, w, c = raw.shape
    rt = h // tile_h
    return pl.pallas_call(
        _bn_relu_pool_kernel,
        grid=(n, rt),
        in_specs=[
            pl.BlockSpec((1, tile_h, w, c), lambda i, r: (i, r, 0, 0)),
            pl.BlockSpec((1, c), lambda i, r: (0, 0)),
            pl.BlockSpec((1, c), lambda i, r: (0, 0)),
        ],
        out_specs=pl.BlockSpec((1, tile_h // 2, w // 2, c),
                               lambda i, r: (i, r, 0, 0)),
        out_shape=jax.ShapeDtypeStruct((n, h // 2, w // 2, c), jnp.float32),
        compiler_params=pltpu.CompilerParams(
            dimension_semantics=("parallel", "parallel"),
            vmem_limit_bytes=_VMEM_LIMIT,
        ),
    )(raw, scale, shift)


def vggish_conv_block(x_nchw, w1_hwio, gamma1, beta1, w2_hwio, gamma2, beta2):
    n, cin, h, w = x_nchw.shape
    cout = w1_hwio.shape[-1]
    assert h % 2 == 0 and w % 2 == 0, "even H/W required for the 2x2 pool"
    count = n * h * w

    # Boundary layout glue (NCHW -> NHWC). TODO(synk): fold into kernel DMAs.
    x = jnp.transpose(x_nchw, (0, 2, 3, 1))

    # bf16 weights for the MXU; tap t = 3*dy + dx along the contraction dim.
    w1m = w1_hwio.reshape(9 * cin, cout).astype(jnp.bfloat16)
    w2m = w2_hwio.reshape(9 * cout, cout).astype(jnp.bfloat16)

    tile_h = _pick_tile_h(h, w, max(cin, cout))

    # conv1 (no input activation) -> bf16 raw1 + BN1 stats.
    ones = jnp.ones((1, cin), jnp.float32)
    zeros = jnp.zeros((1, cin), jnp.float32)
    raw1, st1 = _conv_bn_fused(x, w1m, ones, zeros, cout, tile_h,
                               apply_act=False)
    sc1, sh1 = _bn_scale_shift(st1, gamma1, beta1, count)

    # conv2 with BN1+ReLU fused into its input path -> bf16 raw2 + BN2 stats.
    raw2, st2 = _conv_bn_fused(raw1, w2m, sc1, sh1, cout, tile_h,
                               apply_act=True)
    sc2, sh2 = _bn_scale_shift(st2, gamma2, beta2, count)

    # BN2 + ReLU + 2x2 max pool.
    out = _bn_relu_pool(raw2, sc2, sh2, tile_h)
    return jnp.transpose(out, (0, 3, 1, 2))                        # NHWC -> NCHW


# ----------------------------------------------------------------------------
# Pure-JAX reference (mirrors the kernel's bf16 MXU / bf16-raw precision so the
# correctness check can use a tight tolerance; semantics match the PyTorch
# forward modulo the documented bf16 matmul precision).
# ----------------------------------------------------------------------------
def reference(x_nchw, w1_hwio, gamma1, beta1, w2_hwio, gamma2, beta2):
    f32, bf16 = jnp.float32, jnp.bfloat16

    def conv(x, w):
        return jax.lax.conv_general_dilated(
            x.astype(bf16), w.astype(bf16), (1, 1), "SAME",
            dimension_numbers=("NHWC", "HWIO", "NHWC"),
            preferred_element_type=f32)

    def bn_params(y, g, b):
        mean = jnp.mean(y, axis=(0, 1, 2))
        var = jnp.maximum(jnp.mean(y * y, axis=(0, 1, 2)) - mean * mean, 0.0)
        scale = g * jax.lax.rsqrt(var + _EPS)
        return scale, b - mean * scale

    x = jnp.transpose(x_nchw, (0, 2, 3, 1))
    y1 = conv(x, w1_hwio)
    s1, t1 = bn_params(y1, gamma1, beta1)
    a1 = jnp.maximum(y1.astype(bf16).astype(f32) * s1 + t1, 0.0)   # raw1 in bf16
    y2 = conv(a1, w2_hwio)
    s2, t2 = bn_params(y2, gamma2, beta2)
    a2 = jnp.maximum(y2.astype(bf16).astype(f32) * s2 + t2, 0.0)   # raw2 in bf16
    p = jax.lax.reduce_window(a2, -jnp.inf, jax.lax.max,
                              (1, 2, 2, 1), (1, 2, 2, 1), "VALID")
    return jnp.transpose(p, (0, 3, 1, 2))


# ----------------------------------------------------------------------------
# Deterministic parameter init (matches init_layer / init_bn semantics)
# ----------------------------------------------------------------------------
def init_conv_weight(key, cin, cout):
    n = cin * 3 * 3
    std = math.sqrt(2.0 / n)
    scale = std * math.sqrt(3.0)
    # HWIO layout: (3, 3, Cin, Cout)
    return jax.random.uniform(key, (3, 3, cin, cout), jnp.float32, -scale, scale)


if __name__ == "__main__":
    batch, in_channels, out_channels, H, W = 2, 4, 8, 16, 16

    key = jax.random.PRNGKey(0)
    kx, kw1, kw2 = jax.random.split(key, 3)

    x_nchw = jax.random.normal(kx, (batch, in_channels, H, W), jnp.float32)

    w1 = init_conv_weight(kw1, in_channels, out_channels)
    w2 = init_conv_weight(kw2, out_channels, out_channels)
    gamma1 = jnp.ones((out_channels,), jnp.float32)    # bn weight = 1
    beta1 = jnp.zeros((out_channels,), jnp.float32)    # bn bias = 0
    gamma2 = jnp.ones((out_channels,), jnp.float32)
    beta2 = jnp.zeros((out_channels,), jnp.float32)

    out = vggish_conv_block(x_nchw, w1, gamma1, beta1, w2, gamma2, beta2)
    out = jax.block_until_ready(out)

    ref = reference(x_nchw, w1, gamma1, beta1, w2, gamma2, beta2)
    assert out.shape == (batch, out_channels, H // 2, W // 2), out.shape
    assert jnp.allclose(out, ref, atol=5e-3, rtol=5e-3), \
        f"max abs diff {jnp.max(jnp.abs(out - ref))}"

    print("KERNEL_OK")
</pallas_src>

<mosaic_0001>
module attributes {stable_mosaic.version = 11 : i64} {
  func.func @_conv_stats_kernel(%arg0: i32, %arg1: i32, %arg2: memref<1x16x16x4xf32, #tpu.memory_space<vmem>>, %arg3: memref<36x8xbf16, #tpu.memory_space<vmem>>, %arg4: memref<1x4xf32, #tpu.memory_space<vmem>>, %arg5: memref<1x4xf32, #tpu.memory_space<vmem>>, %arg6: memref<1x16x16x8xbf16, #tpu.memory_space<vmem>>, %arg7: memref<1x2x8xf32, #tpu.memory_space<vmem>>) attributes {dimension_semantics = [#tpu.dimension_semantics<parallel>, #tpu.dimension_semantics<arbitrary>], iteration_bounds = array<i64: 2, 1>, scalar_prefetch = 0 : i64, scratch_operands = 0 : i64, tpu.core_type = #tpu.core_type<tc>, window_params = [{transform_indices = @transform_0, window_bounds = array<i64: 1, 16, 16, 4>}, {pipeline_mode = #tpu.pipeline_mode<synchronous>, transform_indices = @transform_1, window_bounds = array<i64: 36, 8>}, {pipeline_mode = #tpu.pipeline_mode<synchronous>, transform_indices = @transform_2, window_bounds = array<i64: 1, 4>}, {pipeline_mode = #tpu.pipeline_mode<synchronous>, transform_indices = @transform_3, window_bounds = array<i64: 1, 4>}, {transform_indices = @transform_4, window_bounds = array<i64: 1, 16, 16, 8>}, {transform_indices = @transform_5, window_bounds = array<i64: 1, 2, 8>}]} {
    %c16_i32 = arith.constant 16 : i32
    %0 = arith.muli %arg1, %c16_i32 : i32
    %1 = tpu.assume_multiple %0, 16 : i32
    %c0 = arith.constant 0 : index
    %2 = arith.index_cast %1 : i32 to index
    %c0_0 = arith.constant 0 : index
    %c0_1 = arith.constant 0 : index
    %3 = vector.load %arg2[%c0, %2, %c0_0, %c0_1] : memref<1x16x16x4xf32, #tpu.memory_space<vmem>>, vector<1x16x16x4xf32>
    %4 = vector.shape_cast %3 : vector<1x16x16x4xf32> to vector<16x16x4xf32>
    %c1_i32 = arith.constant 1 : i32
    %5 = arith.subi %1, %c1_i32 : i32
    %c0_i32 = arith.constant 0 : i32
    %6 = arith.maxsi %5, %c0_i32 : i32
    %c0_2 = arith.constant 0 : index
    %7 = arith.index_cast %6 : i32 to index
    %c0_3 = arith.constant 0 : index
    %c0_4 = arith.constant 0 : index
    %8 = vector.load %arg2[%c0_2, %7, %c0_3, %c0_4] : memref<1x16x16x4xf32, #tpu.memory_space<vmem>>, vector<1x1x16x4xf32>
    %9 = vector.shape_cast %8 : vector<1x1x16x4xf32> to vector<1x16x4xf32>
    %c16_i32_5 = arith.constant 16 : i32
    %10 = arith.addi %1, %c16_i32_5 : i32
    %c15_i32 = arith.constant 15 : i32
    %11 = arith.minsi %10, %c15_i32 : i32
    %c0_6 = arith.constant 0 : index
    %12 = arith.index_cast %11 : i32 to index
    %c0_7 = arith.constant 0 : index
    %c0_8 = arith.constant 0 : index
    %13 = vector.load %arg2[%c0_6, %12, %c0_7, %c0_8] : memref<1x16x16x4xf32, #tpu.memory_space<vmem>>, vector<1x1x16x4xf32>
    %14 = vector.shape_cast %13 : vector<1x1x16x4xf32> to vector<1x16x4xf32>
    %c0_i32_9 = arith.constant 0 : i32
    %15 = arith.cmpi sgt, %1, %c0_i32_9 : i32
    %cst = arith.constant 1.000000e+00 : f32
    %cst_10 = arith.constant 0.000000e+00 : f32
    %16 = arith.select %15, %cst, %cst_10 : f32
    %17 = arith.truncf %16 : f32 to bf16
    %c16_i32_11 = arith.constant 16 : i32
    %18 = arith.addi %1, %c16_i32_11 : i32
    %c16_i32_12 = arith.constant 16 : i32
    %19 = arith.cmpi slt, %18, %c16_i32_12 : i32
    %cst_13 = arith.constant 1.000000e+00 : f32
    %cst_14 = arith.constant 0.000000e+00 : f32
    %20 = arith.select %19, %cst_13, %cst_14 : f32
    %21 = arith.truncf %20 : f32 to bf16
    %22 = arith.truncf %9 : vector<1x16x4xf32> to vector<1x16x4xbf16>
    %23 = vector.broadcast %17 : bf16 to vector<1x16x4xbf16>
    %24 = arith.mulf %22, %23 : vector<1x16x4xbf16>
    %25 = arith.truncf %4 : vector<16x16x4xf32> to vector<16x16x4xbf16>
    %26 = arith.truncf %14 : vector<1x16x4xf32> to vector<1x16x4xbf16>
    %27 = vector.broadcast %21 : bf16 to vector<1x16x4xbf16>
    %28 = arith.mulf %26, %27 : vector<1x16x4xbf16>
    %29 = tpu.concatenate %24, %25, %28 in 0 : vector<1x16x4xbf16>, vector<16x16x4xbf16>, vector<1x16x4xbf16> -> vector<18x16x4xbf16>
    %cst_15 = arith.constant 0.000000e+00 : bf16
    %30 = vector.broadcast %cst_15 : bf16 to vector<18x1x4xbf16>
    %31 = tpu.concatenate %30, %29, %30 in 1 : vector<18x1x4xbf16>, vector<18x16x4xbf16>, vector<18x1x4xbf16> -> vector<18x18x4xbf16>
    %32 = vector.extract_strided_slice %31 {offsets = [0, 0, 0], sizes = [16, 16, 4], strides = [1, 1, 1]} : vector<18x18x4xbf16> to vector<16x16x4xbf16>
    %33 = vector.shape_cast %32 : vector<16x16x4xbf16> to vector<256x4xbf16>
    %34 = vector.extract_strided_slice %31 {offsets = [0, 1, 0], sizes = [16, 16, 4], strides = [1, 1, 1]} : vector<18x18x4xbf16> to vector<16x16x4xbf16>
    %35 = vector.shape_cast %34 : vector<16x16x4xbf16> to vector<256x4xbf16>
    %36 = vector.extract_strided_slice %31 {offsets = [0, 2, 0], sizes = [16, 16, 4], strides = [1, 1, 1]} : vector<18x18x4xbf16> to vector<16x16x4xbf16>
    %37 = vector.shape_cast %36 : vector<16x16x4xbf16> to vector<256x4xbf16>
    %38 = vector.extract_strided_slice %31 {offsets = [1, 0, 0], sizes = [16, 16, 4], strides = [1, 1, 1]} : vector<18x18x4xbf16> to vector<16x16x4xbf16>
    %39 = vector.shape_cast %38 : vector<16x16x4xbf16> to vector<256x4xbf16>
    %40 = vector.extract_strided_slice %31 {offsets = [1, 1, 0], sizes = [16, 16, 4], strides = [1, 1, 1]} : vector<18x18x4xbf16> to vector<16x16x4xbf16>
    %41 = vector.shape_cast %40 : vector<16x16x4xbf16> to vector<256x4xbf16>
    %42 = vector.extract_strided_slice %31 {offsets = [1, 2, 0], sizes = [16, 16, 4], strides = [1, 1, 1]} : vector<18x18x4xbf16> to vector<16x16x4xbf16>
    %43 = vector.shape_cast %42 : vector<16x16x4xbf16> to vector<256x4xbf16>
    %44 = vector.extract_strided_slice %31 {offsets = [2, 0, 0], sizes = [16, 16, 4], strides = [1, 1, 1]} : vector<18x18x4xbf16> to vector<16x16x4xbf16>
    %45 = vector.shape_cast %44 : vector<16x16x4xbf16> to vector<256x4xbf16>
    %46 = vector.extract_strided_slice %31 {offsets = [2, 1, 0], sizes = [16, 16, 4], strides = [1, 1, 1]} : vector<18x18x4xbf16> to vector<16x16x4xbf16>
    %47 = vector.shape_cast %46 : vector<16x16x4xbf16> to vector<256x4xbf16>
    %48 = vector.extract_strided_slice %31 {offsets = [2, 2, 0], sizes = [16, 16, 4], strides = [1, 1, 1]} : vector<18x18x4xbf16> to vector<16x16x4xbf16>
    %49 = vector.shape_cast %48 : vector<16x16x4xbf16> to vector<256x4xbf16>
    %50 = tpu.concatenate %33, %35, %37, %39, %41, %43, %45, %47, %49 in 1 : vector<256x4xbf16>, vector<256x4xbf16>, vector<256x4xbf16>, vector<256x4xbf16>, vector<256x4xbf16>, vector<256x4xbf16>, vector<256x4xbf16>, vector<256x4xbf16>, vector<256x4xbf16> -> vector<256x36xbf16>
    %c0_16 = arith.constant 0 : index
    %c0_17 = arith.constant 0 : index
    %51 = vector.load %arg3[%c0_16, %c0_17] : memref<36x8xbf16, #tpu.memory_space<vmem>>, vector<36x8xbf16>
    %cst_18 = arith.constant dense<0.000000e+00> : vector<256x8xf32>
    %52 = tpu.matmul %50, %51, %cst_18 {dimension_numbers = #tpu.dot_dimension_numbers<[1], [0], [0], [1], [0, 0, 1, 1], [], []>} : vector<256x36xbf16>, vector<36x8xbf16>, vector<256x8xf32> -> vector<256x8xf32>
    %cst_19 = arith.constant dense<0.000000e+00> : vector<8xf32>
    %53 = vector.multi_reduction <add>, %52, %cst_19 [0] : vector<256x8xf32> to vector<8xf32>
    %54 = vector.shape_cast %53 : vector<8xf32> to vector<1x8xf32>
    %55 = arith.mulf %52, %52 : vector<256x8xf32>
    %cst_20 = arith.constant dense<0.000000e+00> : vector<8xf32>
    %56 = vector.multi_reduction <add>, %55, %cst_20 [0] : vector<256x8xf32> to vector<8xf32>
    %57 = vector.shape_cast %56 : vector<8xf32> to vector<1x8xf32>
    %58 = tpu.concatenate %54, %57 in 0 : vector<1x8xf32>, vector<1x8xf32> -> vector<2x8xf32>
    %59 = vector.shape_cast %58 : vector<2x8xf32> to vector<1x2x8xf32>
    %c0_i32_21 = arith.constant 0 : i32
    %60 = arith.cmpi eq, %arg1, %c0_i32_21 : i32
    %61 = arith.extui %60 : i1 to i32
    %c0_i32_22 = arith.constant 0 : i32
    %62 = arith.cmpi ne, %61, %c0_i32_22 : i32
    scf.if %62 {
      %cst_33 = arith.constant 0.000000e+00 : f32
      %69 = vector.broadcast %cst_33 : f32 to vector<1x2x8xf32>
      %c0_34 = arith.constant 0 : index
      %c0_35 = arith.constant 0 : index
      %c0_36 = arith.constant 0 : index
      %70 = vector.load %arg7[%c0_34, %c0_35, %c0_36] : memref<1x2x8xf32, #tpu.memory_space<vmem>>, vector<1x2x8xf32>
      tpu.vector_store %arg7[%c0_34, %c0_35, %c0_36], %69 {strides = array<i32>} : memref<1x2x8xf32, #tpu.memory_space<vmem>>, vector<1x2x8xf32>,
    } else {
    }
    %c0_23 = arith.constant 0 : index
    %c0_24 = arith.constant 0 : index
    %c0_25 = arith.constant 0 : index
    %63 = vector.load %arg7[%c0_23, %c0_24, %c0_25] : memref<1x2x8xf32, #tpu.memory_space<vmem>>, vector<1x2x8xf32>
    %64 = arith.addf %63, %59 : vector<1x2x8xf32>
    %c0_26 = arith.constant 0 : index
    %c0_27 = arith.constant 0 : index
    %c0_28 = arith.constant 0 : index
    %65 = vector.load %arg7[%c0_26, %c0_27, %c0_28] : memref<1x2x8xf32, #tpu.memory_space<vmem>>, vector<1x2x8xf32>
    tpu.vector_store %arg7[%c0_26, %c0_27, %c0_28], %64 {strides = array<i32>} : memref<1x2x8xf32, #tpu.memory_space<vmem>>, vector<1x2x8xf32>,
    %66 = vector.shape_cast %52 : vector<256x8xf32> to vector<1x16x16x8xf32>
    %67 = arith.truncf %66 : vector<1x16x16x8xf32> to vector<1x16x16x8xbf16>
    %c0_29 = arith.constant 0 : index
    %c0_30 = arith.constant 0 : index
    %c0_31 = arith.constant 0 : index
    %c0_32 = arith.constant 0 : index
    %68 = vector.load %arg6[%c0_29, %c0_30, %c0_31, %c0_32] : memref<1x16x16x8xbf16, #tpu.memory_space<vmem>>, vector<1x16x16x8xbf16>
    tpu.vector_store %arg6[%c0_29, %c0_30, %c0_31, %c0_32], %67 {strides = array<i32>} : memref<1x16x16x8xbf16, #tpu.memory_space<vmem>>, vector<1x16x16x8xbf16>,
    return
  }
  func.func @transform_0(%arg0: i32, %arg1: i32) -> (i32, i32, i32, i32) {
    %c0_i32 = arith.constant 0 : i32
    %c0_i32_0 = arith.constant 0 : i32
    %c0_i32_1 = arith.constant 0 : i32
    %c0_i32_2 = arith.constant 0 : i32
    return %arg0, %c0_i32, %c0_i32_0, %c0_i32_1 : i32, i32, i32, i32
  }
  func.func @transform_1(%arg0: i32, %arg1: i32) -> (i32, i32) {
    %c0_i32 = arith.constant 0 : i32
    %c0_i32_0 = arith.constant 0 : i32
    %c0_i32_1 = arith.constant 0 : i32
    return %c0_i32, %c0_i32_0 : i32, i32
  }
  func.func @transform_2(%arg0: i32, %arg1: i32) -> (i32, i32) {
    %c0_i32 = arith.constant 0 : i32
    %c0_i32_0 = arith.constant 0 : i32
    %c0_i32_1 = arith.constant 0 : i32
    return %c0_i32, %c0_i32_0 : i32, i32
  }
  func.func @transform_3(%arg0: i32, %arg1: i32) -> (i32, i32) {
    %c0_i32 = arith.constant 0 : i32
    %c0_i32_0 = arith.constant 0 : i32
    %c0_i32_1 = arith.constant 0 : i32
    return %c0_i32, %c0_i32_0 : i32, i32
  }
  func.func @transform_4(%arg0: i32, %arg1: i32) -> (i32, i32, i32, i32) {
    %c0_i32 = arith.constant 0 : i32
    %c0_i32_0 = arith.constant 0 : i32
    %c0_i32_1 = arith.constant 0 : i32
    return %arg0, %arg1, %c0_i32, %c0_i32_0 : i32, i32, i32, i32
  }
  func.func @transform_5(%arg0: i32, %arg1: i32) -> (i32, i32, i32) {
    %c0_i32 = arith.constant 0 : i32
    %c0_i32_0 = arith.constant 0 : i32
    %c0_i32_1 = arith.constant 0 : i32
    return %arg0, %c0_i32, %c0_i32_0 : i32, i32, i32
  }
}

</mosaic_0001>

<bundles_post_ra>
// kernel: tpu_custom_call.1
= control target key start
LH: loop header
LB: loop body
LE: loop exit
PB: predicated region body
PF: predicated region fallthrough
CT: control target
= control target key end

     0   :  { %11 = vsyncpa [#allocation3], 0  ;;  %s3310_s0 = inlined_call_operand.vmem [shape: f32[2,16,16,4], index: 0, kind: input, shape index: {}]   ;;  %s3311_s1 = inlined_call_operand.vmem [shape: bf16[36,8], index: 1, kind: input, shape index: {}]   ;;  %s3312_s2 = inlined_call_operand.vmem [shape: f32[1,4], index: 2, kind: input, shape index: {}]   ;;  %s3313_s3 = inlined_call_operand.vmem [shape: f32[1,4], index: 3, kind: input, shape index: {}]   ;;  %s3314_s4 = inlined_call_operand.vmem [shape: bf16[2,16,16,8], index: 4, kind: output, shape index: {0}]   ;;  %s3315_s5 = inlined_call_operand.hbm [shape: f32[2,2,8], index: 5, kind: output, shape index: {1}]  }
   0x1   :  { %13 = vsyncpa [#allocation3 + $0x1], 0  ;;  %s2447_s18 = smov 0   ;;  %s2449_s19 = smov 0  }
   0x2   :  { %s2451_s20 = smov 0   ;;  %s2453_s21 = smov 0  }
   0x3   :  { %s2455_s2 = smov 0   ;;  %s2457_s22 = smov 0  }
   0x4 LB: > { %s2096_s3 = sadd.s32 4294967295, %s2405_s22   ;;  %s2097_s23 = sadd.s32 4294967294, %s2405_s22   ;;  %s2405_s22 = sphi %s2457_s22, %s19_s22   ;;  %s2401_s2 = sphi %s2455_s2, %s3324_s2   ;;  %s2397_s21 = sphi %s2453_s21, %s3323_s21   ;;  %s2393_s20 = sphi %s2451_s20, %s3322_s20   ;;  %s2389_s19 = sphi %s2449_s19, %s3321_s19   ;;  %s2385_s18 = sphi %s2447_s18, %s3320_s18  }
   0x5   : > { %s31_s24 = sadd.s32 1, %s2401_s2  ;;  %s155_s25 = sadd.s32 1, %s2393_s20 }
   0x6   : > { %p33_p0 = scmp.ge.s32.totalorder %s31_s24, 2  ;;  %p165_p1 = scmp.ne.s32.totalorder %s2393_s20, %s2389_s19 }
   0x7   : > { %p166_p2 = scmp.eq.s32.totalorder %s2096_s3, 1  ;;  %p171_p3 = scmp.ne.s32.totalorder %s2389_s19, %s2385_s18 }
   0x8   : > { %s3326_s24 = smov (%p33_p0, %s31_s24), 0  ;;  %p172_p5 = scmp.eq.s32.totalorder %s2097_s23, 1 }
   0x9   : > { %p2487_p4 = por %p166_p2, %p165_p1  ;;  %s152_s27 = ssub.s32 %s2401_s2, %s3326_s24 }
   0xa   : > { %p2100_p6 = scmp.ge.s32.totalorder %s2405_s22, 1  ;;  %p153_p7 = scmp.eq.s32.totalorder %s152_s27, 0 }
   0xb   : > { %p2494_p8 = por %p172_p5, %p171_p3  ;;  %p207_p9 = scmp.lt.s32.totalorder %s2405_s22, 3 }
   0xc   : > { %s2500_s29 = scalar_select %p153_p7, %s2393_s20, %s155_s25  }
   0xd   : > { %p208_p10 = pnand %p2100_p6, %p207_p9 }
   0xe   : > { %p245_p11 = scmp.lt.s32.totalorder (!%p208_p10), %s2397_s21, 1  ;;  %s2407_s10 = smov (!%p208_p10), 12  }
   0xf   : > { %211 = sbr.rel (%p208_p10) target bundleno = 640 (0x280), region = 36  ;;  %s2408_s11 = smov (!%p208_p10), 24  }
  0x10   : > { %s2409_s12 = smov (!%p208_p10), 8   ;;  %s2410_s13 = smov (!%p208_p10), 20  }
  0x11   : > { %s2411_s14 = smov (!%p208_p10), 4   ;;  %s2412_s15 = smov (!%p208_p10), 16  }
  0x12   : > { %s2413_s16 = smov (!%p208_p10), 28   ;;  %s2414_s17 = smov (!%p208_p10), 32  }
  0x13   : > { %s2416_s27 = smov (!%p208_p10), [#allocation2]  }
  0x14   : > { %s2504_s30 = scalar_select %p245_p11, %s2397_s21, 1  ;;  %vm525_vm0 = vcmask 1040384   ;;  %vm526_vm1 = vsmask.f32 256  ;;  %vm789_vm3 = vcmask 1046528   ;;  %vm1445_vm5 = vcmask 1041408  }
  0x15   : > { %vm2519_vm2 = vmand %vm525_vm0, %vm526_vm1  ;;  %vm564_vm4 = vsmask.f32 7424  ;;  %vm1128_vm6 = vcmask 31744   ;;  %vm1161_vm7 = vcmask 64512   ;;  %vm1194_vm8 = vcmask 97280  }
  0x16   : > { %s2163_s6 = sshll.u32 %s2504_s30, 8  ;;  %vm1227_vm9 = vcmask 130048   ;;  %vm1260_vm10 = vcmask 162816   ;;  %vm1293_vm11 = vcmask 195584   ;;  %vm1326_vm12 = vcmask 228352   ;;  %s2164_s8 = sshll.u32 %s2504_s30, 7 }
  0x17   : > { %s2510_s9 = scalar_lea.vmem %s3310_s0, %s2163_s6  ;;  %vm1359_vm13 = vcmask 261120   ;;  %vm1412_vm14 = vcmask 293888   ;;  %vm1920_vm15 = vcmask 60416   ;;  %s242_s30 = sand.u32 1, %s2389_s19   ;;  %vm1786_vm1 = vcmask 58368  }
  0x18   : > { %v267_v0 = vld [vmem:[%s2510_s9 + $0x10] sm:$0xff]  ;;  %v268_v1 = vld [vmem:[%s2510_s9 + $0x18] sm:$0xff]  ;;  %v265_v2 = vld [vmem:[%s2510_s9] sm:$0xff]  ;;  %s1964_s23 = scalar_lea.sflag [#allocation3], %s242_s30 }
  0x19   : > { %v342_v3 = vpack.c.bf16 %v268_v1, %v267_v0  ;;  %v266_v4 = vld [vmem:[%s2510_s9 + $0x8] sm:$0xff]  ;;  %v269_v5 = vld [vmem:[%s2510_s9 + $0x20] sm:$0xff]  ;;  %v271_v46 = vld [vmem:[%s2510_s9 + $0x30] sm:$0xff] }
  0x1a   : > { %v270_v6 = vld [vmem:[%s2510_s9 + $0x28] sm:$0xff]  ;;  %v341_v7 = vpack.c.bf16 %v266_v4, %v265_v2  ;;  %v272_v47 = vld [vmem:[%s2510_s9 + $0x38] sm:$0xff] }
  0x1b   : > { %v343_v8 = vpack.c.bf16 %v270_v6, %v269_v5  ;;  %v378_v9 = vshrl.u32 %v342_v3, 16  ;;  %v381_v10 = vshll.u32 %v342_v3, 16  ;;  %v344_v58 = vpack.c.bf16 %v272_v47, %v271_v46 }
  0x1c   : > { %v371_v11 = vshrl.u32 %v341_v7, 16  ;;  %v374_v12 = vshll.u32 %v341_v7, 16  ;;  %v340_v16 = vmul.bf16 0.0, %v341_v7 }
  0x1d   : > { %v385_v13 = vshrl.u32 %v343_v8, 16  ;;  %v388_v14 = vshll.u32 %v343_v8, 16  ;;  %v380_v15 = vrot.slane %v378_v9, 7  ;;  %v392_v4 = vshrl.u32 %v344_v58, 16 }
  0x1e   : > { %v373_v18 = vrot.slane %v371_v11, 7  ;;  %v364_v21 = vshrl.u32 %v340_v16, 16  ;;  %v367_v25 = vshll.u32 %v340_v16, 16  ;;  %v395_v11 = vshll.u32 %v344_v58, 16 }
  0x1f   : > { %v387_v19 = vrot.slane %v385_v13, 7  ;;  %v383_v20 = vor.u32 %v381_v10, %v380_v15  ;;  %v548_v29 = vsel %vm2519_vm2, %v380_v15, 0  ;;  %v394_v10 = vrot.slane %v392_v4, 7  ;;  %v274_v13 = vld [vmem:[%s2510_s9 + $0x48] sm:$0xff] }
  0x20   : > { %v376_v22 = vor.u32 %v374_v12, %v373_v18  ;;  %v547_v24 = vsel %vm2519_vm2, %v373_v18, 0  ;;  %v366_v27 = vrot.slane %v364_v21, 7  ;;  %v797_v39 = vrot.slane %v548_v29, 1  ;;  %v273_v12 = vld [vmem:[%s2510_s9 + $0x40] sm:$0xff] }
  0x21   : > { %v390_v23 = vor.u32 %v388_v14, %v387_v19  ;;  %v2527_v26 = vsel %vm2519_vm2, 0, %v383_v20  ;;  %v794_v32 = vrot.slane %v547_v24, 1  ;;  %v585_v35 = vshll.u32 %v547_v24, 16 }
  0x22   : > { %938 = vrot.lane.b32.xlu1 %v2527_v26, %s2407_s10  ;;  %v2533_v28 = vsel %vm2519_vm2, 0, %v376_v22  ;;  %v369_v36 = vor.u32 %v367_v25, %v366_v27  ;;  %v796_v38 = vrot.slane %v2527_v26, 1  ;;  %v592_v41 = vshll.u32 %v2527_v26, 16 }
  0x23   : > { %936 = vrot.lane.b32.xlu0 %v2533_v28, %s2407_s10  ;;  %v2541_v30 = vsel %vm2519_vm2, 0, %v390_v23  ;;  %v793_v31 = vrot.slane %v2533_v28, 1  ;;  %v580_v33 = vshll.u32 %v2533_v28, 16  ;;  %v578_v34 = vshrl.u32 %v2533_v28, 16 }
  0x24   : > { %v587_v43 = vrot.slane %v585_v35, 1  ;;  %v2555_v44 = vsel %vm2519_vm2, 0, %v369_v36  ;;  %v546_v45 = vsel %vm2519_vm2, %v366_v27, 0  ;;  %v2563_v48 = vsel %vm789_vm3, %v796_v38, %v797_v39  ;;  %v2327_v36 = vld [vmem:[%s3311_s1 + $0x8] sm:$0xff]  }
  0x25   : > { %v582_v37 = vrot.slane %v580_v33, 1  ;;  %v795_v40 = vsel %vm789_vm3, %v793_v31, %v794_v32  ;;  %v590_v49 = vshrl.u32 %v2527_v26, 16  ;;  %v597_v50 = vshll.u32 %v548_v29, 16  ;;  %v2326_v31 = vld [vmem:[%s3311_s1 + $0x10] ss:$0 sps:$4 sm:$0x33]  }
  0x26   : > { %1034 = vrot.lane.b32.xlu1 %v2541_v30, %s2408_s11  ;;  %v790_v51 = vrot.slane %v2555_v44, 1  ;;  %v791_v52 = vrot.slane %v546_v45, 1  ;;  %v594_v53 = vrot.slane %v592_v41, 1  ;;  %v604_v54 = vshll.u32 %v2541_v30, 16  ;;  %2260 = vmatprep.subr.msk.bf16.mxu0 %vm1445_vm5, %v2326_v31  ;;  %v2328_v41 = vld [vmem:[%s3311_s1] sm:$0xff]  }
  0x27   : > { %1032 = vrot.lane.b32.xlu0 %v2527_v26, %s2408_s11  ;;  %v583_v42 = vor.u32 %v582_v37, %v578_v34  ;;  %v549_v56 = vsel %vm2519_vm2, %v387_v19, 0  ;;  %v568_v57 = vshll.u32 %v2555_v44, 16  ;;  %v599_v59 = vrot.slane %v597_v50, 1  ;;  %2261 = vmatprep.subr.msk.bf16.mxu1 %vm1445_vm5, %v2326_v31 }
  0x28   : > { %v602_v60 = vshrl.u32 %v2541_v30, 16  ;;  %v792_v61 = vsel %vm789_vm3, %v790_v51, %v791_v52  ;;  %v595_v62 = vor.u32 %v594_v53, %v590_v49  ;;  %v606_v63 = vrot.slane %v604_v54, 1 }
  0x29   : > { %v588_v55 = vsel %vm564_vm4, %v583_v42, %v587_v43  ;;  %v609_v0 = vshll.u32 %v549_v56, 16  ;;  %v566_v1 = vshrl.u32 %v2555_v44, 16  ;;  %v570_v2 = vrot.slane %v568_v57, 1  ;;  %v275_v42 = vld [vmem:[%s2510_s9 + $0x50] sm:$0xff]  ;;  %v276_v43 = vld [vmem:[%s2510_s9 + $0x58] sm:$0xff] }
  0x2a   : > { %906 = vrot.lane.b32.xlu1 %v795_v40, %s2409_s12  ;;  %v573_v3 = vshll.u32 %v546_v45, 16  ;;  %v600_v5 = vsel %vm564_vm4, %v595_v62, %v599_v59  ;;  %v607_v6 = vor.u32 %v606_v63, %v602_v60  ;;  %v397_v16 = vor.u32 %v395_v11, %v394_v10  ;;  %v277_v60 = vld [vmem:[%s2510_s9 + $0x60] sm:$0xff] }
  0x2b   : > { %1000 = vrot.lane.b32.xlu0 %v795_v40, %s2410_s13  ;;  %v611_v7 = vrot.slane %v609_v0, 1  ;;  %v571_v8 = vor.u32 %v570_v2, %v566_v1  ;;  %v345_v18 = vpack.c.bf16 %v274_v13, %v273_v12  ;;  %v799_v19 = vrot.slane %v2541_v30, 1 }
  0x2c   : > { %v575_v9 = vrot.slane %v573_v3, 1  ;;  %v800_v20 = vrot.slane %v549_v56, 1  ;;  %v2593_v21 = vsel %vm2519_vm2, 0, %v397_v16  ;;  %v550_v25 = vsel %vm2519_vm2, %v394_v10, 0 }
  0x2d   : > { %v612_v14 = vsel %vm564_vm4, %v607_v6, %v611_v7  ;;  %v399_v22 = vshrl.u32 %v345_v18, 16  ;;  %v616_v23 = vshll.u32 %v2593_v21, 16  ;;  %v402_v29 = vshll.u32 %v345_v18, 16  ;;  %v279_v18 = vld [vmem:[%s2510_s9 + $0x70] sm:$0xff] }
  0x2e   : > { %1002 = vrot.lane.b32.xlu1 %v2563_v48, %s2410_s13  ;;  %v576_v15 = vsel %vm564_vm4, %v571_v8, %v575_v9  ;;  %v801_v24 = vsel %vm789_vm3, %v799_v19, %v800_v20  ;;  %v614_v32 = vshrl.u32 %v2593_v21, 16  ;;  %v621_v34 = vshll.u32 %v550_v25, 16  ;;  %v280_v19 = vld [vmem:[%s2510_s9 + $0x78] sm:$0xff] }
  0x2f   : > { %874 = vrot.lane.b32.xlu0 %v588_v55, %s2411_s14  ;;  %v401_v27 = vrot.slane %v399_v22, 7  ;;  %v618_v33 = vrot.slane %v616_v23, 1  ;;  %v1447_v37 = vsel %vm1445_vm5, %v2326_v31, 0  ;;  %v802_v46 = vrot.slane %v2593_v21, 1 }
  0x30   : > { %v623_v39 = vrot.slane %v621_v34, 1  ;;  %2217 = vmatpush3.bf16.msra.mxu0 %v1447_v37  ;;  %2257 = vmatpush3.bf16.msra.mxu1 %v1447_v37  ;;  %v803_v47 = vrot.slane %v550_v25, 1  ;;  %v346_v50 = vpack.c.bf16 %v276_v43, %v275_v42 }
  0x31   : > { %v404_v35 = vor.u32 %v402_v29, %v401_v27  ;;  %v619_v38 = vor.u32 %v618_v33, %v614_v32  ;;  %2218 = vmatprep.subr.bf16.mxu0 %v2327_v36  ;;  %2255 = vmatprep.subr.bf16.mxu1 %v2327_v36  ;;  %v551_v49 = vsel %vm2519_vm2, %v401_v27, 0  ;;  %v348_v27 = vpack.c.bf16 %v280_v19, %v279_v18 }
  0x32   : > { %904 = vrot.lane.b32.xlu1 %v792_v61, %s2409_s12  ;;  %v804_v51 = vsel %vm789_vm3, %v802_v46, %v803_v47  ;;  %v633_v54 = vshll.u32 %v551_v49, 16  ;;  %v409_v59 = vshll.u32 %v346_v50, 16  ;;  %v278_v61 = vld [vmem:[%s2510_s9 + $0x68] sm:$0xff]  ;;  %v806_v2 = vrot.slane %v551_v49, 1 }
  0x33   : > { %968 = vrot.lane.b32.xlu0 %v588_v55, %s2412_s15  ;;  %v2616_v40 = vsel %vm2519_vm2, 0, %v404_v35  ;;  %v624_v45 = vsel %vm564_vm4, %v619_v38, %v623_v39  ;;  %v406_v55 = vshrl.u32 %v346_v50, 16  ;;  %v347_v0 = vpack.c.bf16 %v278_v61, %v277_v60  ;;  %v281_v39 = vld [vmem:[%s2510_s9 + $0x80] sm:$0xff] }
  0x34   : > { %2219 = vmatpush3.bf16.msra.mxu0 %v2327_v36  ;;  %2258 = vmatpush3.bf16.msra.mxu1 %v2327_v36  ;;  %v626_v52 = vshrl.u32 %v2616_v40, 16  ;;  %v635_v57 = vrot.slane %v633_v54, 1  ;;  %v805_v1 = vrot.slane %v2616_v40, 1  ;;  %v420_v34 = vshrl.u32 %v348_v27, 16 }
  0x35   : > { %2220 = vmatprep.subr.bf16.mxu0 %v2328_v41  ;;  %2256 = vmatprep.subr.bf16.mxu1 %v2328_v41  ;;  %v408_v58 = vrot.slane %v406_v55, 7  ;;  %v413_v4 = vshrl.u32 %v347_v0, 16  ;;  %v416_v9 = vshll.u32 %v347_v0, 16  ;;  %v423_v38 = vshll.u32 %v348_v27, 16 }
  0x36   : > { %970 = vrot.lane.b32.xlu1 %v600_v5, %s2412_s15  ;;  %v807_v6 = vsel %vm789_vm3, %v805_v1, %v806_v2  ;;  %v422_v37 = vrot.slane %v420_v34, 7 }
  0x37   : > { %1064 = vrot.lane.b32.xlu0 %v600_v5, %s2413_s16  ;;  %v411_v63 = vor.u32 %v409_v59, %v408_v58  ;;  %v552_v7 = vsel %vm2519_vm2, %v408_v58, 0  ;;  %v415_v8 = vrot.slane %v413_v4, 7 }
  0x38   : > { %2221 = vmatpush3.bf16.msra.mxu0 %v2328_v41  ;;  %2259 = vmatpush3.bf16.msra.mxu1 %v2328_v41  ;;  %v645_v12 = vshll.u32 %v552_v7, 16  ;;  %v809_v23 = vrot.slane %v552_v7, 1  ;;  %v282_v41 = vld [vmem:[%s2510_s9 + $0x88] sm:$0xff]  ;;  %v425_v43 = vor.u32 %v423_v38, %v422_v37 }
  0x39   : > { %v2650_v3 = vsel %vm2519_vm2, 0, %v411_v63  ;;  %v418_v13 = vor.u32 %v416_v9, %v415_v8  ;;  %v553_v25 = vsel %vm2519_vm2, %v415_v8, 0  ;;  %v284_v63 = vld [vmem:[%s2510_s9 + $0x98] sm:$0xff] }
  0x3a   : > { %1066 = vrot.lane.b32.xlu1 %v612_v14, %s2413_s16  ;;  %v638_v10 = vshrl.u32 %v2650_v3, 16  ;;  %v808_v22 = vrot.slane %v2650_v3, 1  ;;  %v657_v33 = vshll.u32 %v553_v25, 16  ;;  %v812_v47 = vrot.slane %v553_v25, 1 }
  0x3b   : > { %872 = vrot.lane.b32.xlu0 %v576_v15, %s2411_s14  ;;  %v647_v15 = vrot.slane %v645_v12, 1  ;;  %v2665_v16 = vsel %vm2519_vm2, 0, %v418_v13 }
  0x3c   : > { %v810_v29 = vsel %vm789_vm3, %v808_v22, %v809_v23  ;;  %v650_v31 = vshrl.u32 %v2665_v16, 16  ;;  %v659_v36 = vrot.slane %v657_v33, 1  ;;  %v811_v46 = vrot.slane %v2665_v16, 1  ;;  %v286_v22 = vld [vmem:[%s2510_s9 + $0xa8] sm:$0xff] }
  0x3e   : > { %876 = vrot.lane.b32.xlu1 %v600_v5, %s2411_s14  ;;  %v640_v5 = vshll.u32 %v2650_v3, 16 }
  0x3f   : > { %1096 = vrot.lane.b32.xlu0 %v2563_v48, %s2414_s17 }
  0x40   : > { %v642_v11 = vrot.slane %v640_v5, 1 }
  0x42   : > { %878 = vrot.lane.b32.xlu1 %v612_v14, %s2411_s14 }
  0x43   : > { %1098 = vrot.lane.b32.xlu0 %v801_v24, %s2414_s17 }
  0x46   : > { %910 = vrot.lane.b32.xlu1 %v801_v24, %s2409_s12 }
  0x47   : > { %908 = vrot.lane.b32.xlu0 %v2563_v48, %s2409_s12  ;;  %v628_v48 = vshll.u32 %v2616_v40, 16 }
  0x49   : > { %v630_v53 = vrot.slane %v628_v48, 1  ;;  %v2696_v48 = vsel %vm2519_vm2, 0, %v425_v43 }
  0x4a   : > { %942 = vrot.lane.b32.xlu1 %v2593_v21, %s2407_s10  ;;  %v664_v50 = vshll.u32 %v2696_v48, 16  ;;  %v662_v55 = vshrl.u32 %v2696_v48, 16  ;;  %v814_v1 = vrot.slane %v2696_v48, 1 }
  0x4b   : > { %940 = vrot.lane.b32.xlu0 %v2541_v30, %s2407_s10  ;;  %v631_v56 = vor.u32 %v630_v53, %v626_v52  ;;  %v554_v52 = vsel %vm2519_vm2, %v422_v37, 0 }
  0x4c   : > { %v815_v2 = vrot.slane %v554_v52, 1 }
  0x4d   : > { %v636_v62 = vsel %vm564_vm4, %v631_v56, %v635_v57  ;;  %v666_v56 = vrot.slane %v664_v50, 1  ;;  %v669_v57 = vshll.u32 %v554_v52, 16 }
  0x4e   : > { %974 = vrot.lane.b32.xlu1 %v624_v45, %s2412_s15  ;;  %v816_v7 = vsel %vm789_vm3, %v814_v1, %v815_v2 }
  0x4f   : > { %972 = vrot.lane.b32.xlu0 %v612_v14, %s2412_s15  ;;  %v643_v14 = vor.u32 %v642_v11, %v638_v10  ;;  %v667_v59 = vor.u32 %v666_v56, %v662_v55  ;;  %v671_v60 = vrot.slane %v669_v57, 1 }
  0x51   : > { %v648_v20 = vsel %vm564_vm4, %v643_v14, %v647_v15  ;;  %v672_v0 = vsel %vm564_vm4, %v667_v59, %v671_v60  ;;  %v287_v60 = vld [vmem:[%s2510_s9 + $0xb0] sm:$0xff] }
  0x52   : > { %1006 = vrot.lane.b32.xlu1 %v804_v51, %s2410_s13 }
  0x53   : > { %1004 = vrot.lane.b32.xlu0 %v801_v24, %s2410_s13  ;;  %v652_v24 = vshll.u32 %v2665_v16, 16 }
  0x55   : > { %v654_v32 = vrot.slane %v652_v24, 1 }
  0x56   : > { %1038 = vrot.lane.b32.xlu1 %v2616_v40, %s2408_s11 }
  0x57   : > { %1036 = vrot.lane.b32.xlu0 %v2593_v21, %s2408_s11  ;;  %v655_v35 = vor.u32 %v654_v32, %v650_v31 }
  0x59   : > { %v660_v42 = vsel %vm564_vm4, %v655_v35, %v659_v36 }
  0x5a   : > { %1070 = vrot.lane.b32.xlu1 %v636_v62, %s2413_s16 }
  0x5b   : > { %1068 = vrot.lane.b32.xlu0 %v624_v45, %s2413_s16 }
  0x5e   : > { %880 = vrot.lane.b32.xlu1 %v624_v45, %s2411_s14  ;;  %v349_v45 = vpack.c.bf16 %v282_v41, %v281_v39 }
  0x5f   : > { %1100 = vrot.lane.b32.xlu0 %v804_v51, %s2414_s17 }
  0x60   : > { %v427_v49 = vshrl.u32 %v349_v45, 16  ;;  %v430_v54 = vshll.u32 %v349_v45, 16 }
  0x62   : > { %882 = vrot.lane.b32.xlu1 %v636_v62, %s2411_s14  ;;  %v429_v53 = vrot.slane %v427_v49, 7 }
  0x63   : > { %1102 = vrot.lane.b32.xlu0 %v807_v6, %s2414_s17 }
  0x64   : > { %v432_v58 = vor.u32 %v430_v54, %v429_v53  ;;  %v555_v5 = vsel %vm2519_vm2, %v429_v53, 0 }
  0x65   : > { %v681_v10 = vshll.u32 %v555_v5, 16  ;;  %v818_v33 = vrot.slane %v555_v5, 1 }
  0x66   : > { %914 = vrot.lane.b32.xlu1 %v807_v6, %s2409_s12  ;;  %v2711_v61 = vsel %vm2519_vm2, 0, %v432_v58 }
  0x67   : > { %912 = vrot.lane.b32.xlu0 %v804_v51, %s2409_s12  ;;  %v813_v51 = vsel %vm789_vm3, %v811_v46, %v812_v47  ;;  %v676_v4 = vshll.u32 %v2711_v61, 16  ;;  %v674_v8 = vshrl.u32 %v2711_v61, 16  ;;  %v683_v13 = vrot.slane %v681_v10, 1 }
  0x68   : > { %v817_v32 = vrot.slane %v2711_v61, 1 }
  0x69   : > { %v678_v9 = vrot.slane %v676_v4, 1 }
  0x6a   : > { %946 = vrot.lane.b32.xlu1 %v2650_v3, %s2407_s10  ;;  %v819_v39 = vsel %vm789_vm3, %v817_v32, %v818_v33 }
  0x6b   : > { %944 = vrot.lane.b32.xlu0 %v2616_v40, %s2407_s10  ;;  %v679_v12 = vor.u32 %v678_v9, %v674_v8 }
  0x6d   : > { %v2739_v23 = vsel %vm564_vm4, %v679_v12, %v683_v13 }
  0x6e   : > { %978 = vrot.lane.b32.xlu1 %v648_v20, %s2412_s15 }
  0x6f   : > { %976 = vrot.lane.b32.xlu0 %v636_v62, %s2412_s15  ;;  %v283_v62 = vld [vmem:[%s2510_s9 + $0x90] sm:$0xff] }
  0x72   : > { %1010 = vrot.lane.b32.xlu1 %v810_v29, %s2410_s13 }
  0x73   : > { %1008 = vrot.lane.b32.xlu0 %v807_v6, %s2410_s13  ;;  %v350_v6 = vpack.c.bf16 %v284_v63, %v283_v62  ;;  %v288_v62 = vld [vmem:[%s2510_s9 + $0xb8] sm:$0xff] }
  0x75   : > { %v434_v11 = vshrl.u32 %v350_v6, 16  ;;  %v437_v18 = vshll.u32 %v350_v6, 16 }
  0x76   : > { %1042 = vrot.lane.b32.xlu1 %v2665_v16, %s2408_s11 }
  0x77   : > { %1040 = vrot.lane.b32.xlu0 %v2650_v3, %s2408_s11  ;;  %v436_v15 = vrot.slane %v434_v11, 7 }
  0x79   : > { %v439_v25 = vor.u32 %v437_v18, %v436_v15  ;;  %v556_v41 = vsel %vm2519_vm2, %v436_v15, 0 }
  0x7a   : > { %1074 = vrot.lane.b32.xlu1 %v660_v42, %s2413_s16  ;;  %v693_v49 = vshll.u32 %v556_v41, 16  ;;  %v821_v63 = vrot.slane %v556_v41, 1 }
  0x7b   : > { %1072 = vrot.lane.b32.xlu0 %v648_v20, %s2413_s16  ;;  %v2751_v34 = vsel %vm2519_vm2, 0, %v439_v25 }
  0x7c   : > { %v688_v37 = vshll.u32 %v2751_v34, 16  ;;  %v686_v46 = vshrl.u32 %v2751_v34, 16  ;;  %v695_v55 = vrot.slane %v693_v49, 1 }
  0x7e   : > { %884 = vrot.lane.b32.xlu1 %v648_v20, %s2411_s14  ;;  %v285_v20 = vld [vmem:[%s2510_s9 + $0xa0] sm:$0xff]  ;;  %v690_v47 = vrot.slane %v688_v37, 1 }
  0x7f   : > { %1104 = vrot.lane.b32.xlu0 %v810_v29, %s2414_s17  ;;  %v351_v27 = vpack.c.bf16 %v286_v22, %v285_v20 }
  0x80   : > { %v691_v54 = vor.u32 %v690_v47, %v686_v46 }
  0x81   : > { %v441_v35 = vshrl.u32 %v351_v27, 16  ;;  %v444_v43 = vshll.u32 %v351_v27, 16 }
  0x82   : > { %886 = vrot.lane.b32.xlu1 %v660_v42, %s2411_s14  ;;  %v696_v1 = vsel %vm564_vm4, %v691_v54, %v695_v55 }
  0x83   : > { %1106 = vrot.lane.b32.xlu0 %v813_v51, %s2414_s17 }
  0x86   : > { %918 = vrot.lane.b32.xlu1 %v813_v51, %s2409_s12 }
  0x87   : > { %916 = vrot.lane.b32.xlu0 %v810_v29, %s2409_s12 }
  0x8a   : > { %950 = vrot.lane.b32.xlu1 %v2696_v48, %s2407_s10 }
  0x8b   : > { %948 = vrot.lane.b32.xlu0 %v2665_v16, %s2407_s10 }
  0x8e   : > { %982 = vrot.lane.b32.xlu1 %v672_v0, %s2412_s15 }
  0x8f   : > { %980 = vrot.lane.b32.xlu0 %v660_v42, %s2412_s15  ;;  %v443_v42 = vrot.slane %v441_v35, 7 }
  0x91   : > { %v2785_v2 = vsel %vm2519_vm2, %v443_v42, 0 }
  0x92   : > { %1014 = vrot.lane.b32.xlu1 %v816_v7, %s2410_s13  ;;  %v705_v11 = vshll.u32 %v2785_v2, 16 }
  0x93   : > { %1012 = vrot.lane.b32.xlu0 %v813_v51, %s2410_s13  ;;  %v446_v51 = vor.u32 %v444_v43, %v443_v42  ;;  %v290_v43 = vld [vmem:[%s2510_s9 + $0xc8] sm:$0xff] }
  0x94   : > { %v939_v14 = vpop.permute.xlu1 %938  ;;  %v707_v32 = vrot.slane %v705_v11, 1 }
  0x95   : > { %v2730_v19 = vpop.permute.xlu0 %936  ;;  %v2772_v58 = vsel %vm2519_vm2, 0, %v446_v51 }
  0x96   : > { %1046 = vrot.lane.b32.xlu1 %v2711_v61, %s2408_s11  ;;  %v700_v4 = vshll.u32 %v2772_v58, 16  ;;  %v823_v51 = vrot.slane %v2772_v58, 1 }
  0x97   : > { %1044 = vrot.lane.b32.xlu0 %v2696_v48, %s2408_s11 }
  0x98   : > { %v2741_v24 = vpop.permute.xlu1 %1034  ;;  %v702_v15 = vrot.slane %v700_v4, 1 }
  0x99   : > { %v2743_v29 = vpop.permute.xlu0 %1032 }
  0x9a   : > { %1078 = vrot.lane.b32.xlu1 %v2739_v23, %s2413_s16 }
  0x9b   : > { %1076 = vrot.lane.b32.xlu0 %v672_v0, %s2413_s16 }
  0x9c   : > { %v907_v31 = vpop.permute.xlu1 %906 }
  0x9d   : > { %v2753_v36 = vpop.permute.xlu0 %1000 }
  0x9e   : > { %888 = vrot.lane.b32.xlu1 %v672_v0, %s2411_s14 }
  0x9f   : > { %1108 = vrot.lane.b32.xlu0 %v816_v7, %s2414_s17 }
  0xa0   : > { %v1003_v38 = vpop.permute.xlu1 %1002 }
  0xa1   : > { %v875_v45 = vpop.permute.xlu0 %874 }
  0xa2   : > { %890 = vrot.lane.b32.xlu1 %v2739_v23, %s2411_s14  ;;  %v1132_v52 = vsel %vm1128_vm6, %v2533_v28, %v875_v45  ;;  %v820_v28 = vrot.slane %v2751_v34, 1 }
  0xa3   : > { %1110 = vrot.lane.b32.xlu0 %v819_v39, %s2414_s17  ;;  %v1165_v56 = vsel %vm1161_vm7, %v1132_v52, %v907_v31  ;;  %v824_v52 = vrot.slane %v2785_v2, 1 }
  0xa4   : > { %v905_v50 = vpop.permute.xlu1 %904  ;;  %v1198_v0 = vsel %vm1194_vm8, %v1165_v56, %v939_v14  ;;  %v2793_v10 = vsel %vm789_vm3, %v820_v28, %v821_v63  ;;  %v698_v14 = vshrl.u32 %v2772_v58, 16 }
  0xa5   : > { %v969_v53 = vpop.permute.xlu0 %968 }
  0xa6   : > { %922 = vrot.lane.b32.xlu1 %v819_v39, %s2409_s12  ;;  %v703_v31 = vor.u32 %v702_v15, %v698_v14  ;;  %v292_v14 = vld [vmem:[%s2510_s9 + $0xd8] sm:$0xff] }
  0xa7   : > { %920 = vrot.lane.b32.xlu0 %v816_v7, %s2409_s12  ;;  %v352_v7 = vpack.c.bf16 %v288_v62, %v287_v60 }
  0xa8   : > { %v971_v57 = vpop.permute.xlu1 %970 }
  0xa9   : > { %v1065_v59 = vpop.permute.xlu0 %1064  ;;  %v1231_v5 = vsel %vm1227_vm9, %v1198_v0, %v971_v57  ;;  %v448_v20 = vshrl.u32 %v352_v7, 16  ;;  %v451_v37 = vshll.u32 %v352_v7, 16 }
  0xaa   : > { %954 = vrot.lane.b32.xlu1 %v2751_v34, %s2407_s10  ;;  %v1264_v12 = vsel %vm1260_vm10, %v1231_v5, %v1003_v38 }
  0xab   : > { %952 = vrot.lane.b32.xlu0 %v2711_v61, %s2407_s10  ;;  %v1297_v27 = vsel %vm1293_vm11, %v1264_v12, %v2741_v24  ;;  %v450_v35 = vrot.slane %v448_v20, 7 }
  0xac   : > { %v1067_v6 = vpop.permute.xlu1 %1066 }
  0xad   : > { %v873_v8 = vpop.permute.xlu0 %872  ;;  %v1330_v38 = vsel %vm1326_vm12, %v1297_v27, %v1067_v6  ;;  %v453_v46 = vor.u32 %v451_v37, %v450_v35  ;;  %v558_v60 = vsel %vm2519_vm2, %v450_v35, 0 }
  0xae   : > { %v1130_v9 = vsel %vm1128_vm6, %v2555_v44, %v873_v8  ;;  %986 = vrot.lane.b32.xlu1 %v696_v1, %s2412_s15  ;;  %v717_v2 = vshll.u32 %v558_v60, 16 }
  0xaf   : > { %v1163_v13 = vsel %vm1161_vm7, %v1130_v9, %v905_v50  ;;  %984 = vrot.lane.b32.xlu0 %v2739_v23, %s2412_s15 }
  0xb0   : > { %v1196_v44 = vsel %vm1194_vm8, %v1163_v13, %v2730_v19  ;;  %v2803_v18 = vpop.permute.xlu1 %876  ;;  %v719_v8 = vrot.slane %v717_v2, 1  ;;  %v291_v13 = vld [vmem:[%s2510_s9 + $0xd0] sm:$0xff] }
  0xb1   : > { %v1229_v22 = vsel %vm1227_vm9, %v1196_v44, %v969_v53  ;;  %v1097_v25 = vpop.permute.xlu0 %1096  ;;  %v2836_v53 = vsel %vm2519_vm2, 0, %v453_v46  ;;  %v827_v44 = vrot.slane %v558_v60, 1  ;;  %v293_v60 = vld [vmem:[%s2510_s9 + $0xe0] sm:$0xff] }
  0xb2   : > { %1018 = vrot.lane.b32.xlu1 %v2793_v10, %s2410_s13  ;;  %v1262_v23 = vsel %vm1260_vm10, %v1229_v22, %v2753_v36  ;;  %v289_v36 = vld [vmem:[%s2510_s9 + $0xc0] sm:$0xff]  ;;  %v712_v56 = vshll.u32 %v2836_v53, 16  ;;  %v710_v0 = vshrl.u32 %v2836_v53, 16  ;;  %v826_v15 = vrot.slane %v2836_v53, 1 }
  0xb3   : > { %1016 = vrot.lane.b32.xlu0 %v819_v39, %s2410_s13  ;;  %v1295_v19 = vsel %vm1293_vm11, %v1262_v23, %v2743_v29  ;;  %v708_v29 = vsel %vm564_vm4, %v703_v31, %v707_v32  ;;  %v353_v47 = vpack.c.bf16 %v290_v43, %v289_v36 }
  0xb4   : > { %v2815_v33 = vpop.permute.xlu1 %878  ;;  %v1328_v24 = vsel %vm1326_vm12, %v1295_v19, %v1065_v59  ;;  %v825_v59 = vsel %vm789_vm3, %v823_v51, %v824_v52  ;;  %v354_v19 = vpack.c.bf16 %v292_v14, %v291_v13 }
  0xb5   : > { %v1099_v41 = vpop.permute.xlu0 %1098  ;;  %v1361_v42 = vsel %vm1359_vm13, %v1328_v24, %v1097_v25  ;;  %v455_v54 = vshrl.u32 %v353_v47, 16  ;;  %v458_v28 = vshll.u32 %v353_v47, 16  ;;  %v1136_v35 = vsel %vm1128_vm6, %v2541_v30, %v2815_v33 }
  0xb6   : > { %v1363_v39 = vsel %vm1359_vm13, %v1330_v38, %v1099_v41  ;;  %2222 = vmatprep.mubr.msk.bf16.mxu0 %vm1412_vm14, %v1361_v42  ;;  %1050 = vrot.lane.b32.xlu1 %v2772_v58, %s2408_s11 }
  0xb7   : > { %1048 = vrot.lane.b32.xlu0 %v2751_v34, %s2408_s11  ;;  %2223 = vmatmul.mubr.msk.bf16.vlgmr.msra.gmra.mxu0 %vm1412_vm14, %v1363_v39  ;;  %v457_v62 = vrot.slane %v455_v54, 7  ;;  %v462_v39 = vshrl.u32 %v354_v19, 16 }
  0xb8   : > { %v911_v45 = vpop.permute.xlu1 %910 }
  0xb9   : > { %v909_v49 = vpop.permute.xlu0 %908  ;;  %v460_v5 = vor.u32 %v458_v28, %v457_v62  ;;  %v559_v22 = vsel %vm2519_vm2, %v457_v62, 0  ;;  %v1169_v42 = vsel %vm1161_vm7, %v1136_v35, %v911_v45  ;;  %v464_v54 = vrot.slane %v462_v39, 7  ;;  %v294_v62 = vld [vmem:[%s2510_s9 + $0xe8] sm:$0xff] }
  0xba   : > { %1082 = vrot.lane.b32.xlu1 %v708_v29, %s2413_s16 }
  0xbb   : > { %1080 = vrot.lane.b32.xlu0 %v696_v1, %s2413_s16  ;;  %v2853_v11 = vsel %vm2519_vm2, 0, %v460_v5 }
  0xbc   : > { %v943_v50 = vpop.permute.xlu1 %942  ;;  %v724_v25 = vshll.u32 %v2853_v11, 16  ;;  %v722_v38 = vshrl.u32 %v2853_v11, 16  ;;  %v829_v5 = vrot.slane %v2853_v11, 1 }
  0xbd   : > { %v941_v55 = vpop.permute.xlu0 %940  ;;  %v1202_v46 = vsel %vm1194_vm8, %v1169_v42, %v943_v50 }
  0xbe   : > { %892 = vrot.lane.b32.xlu1 %v696_v1, %s2411_s14  ;;  %v714_v1 = vrot.slane %v712_v56, 1  ;;  %v726_v41 = vrot.slane %v724_v25, 1 }
  0xbf   : > { %1112 = vrot.lane.b32.xlu0 %v2793_v10, %s2414_s17 }
  0xc0   : > { %v975_v57 = vpop.permute.xlu1 %974  ;;  %v715_v7 = vor.u32 %v714_v1, %v710_v0  ;;  %v355_v1 = vpack.c.bf16 %v294_v62, %v293_v60 }
  0xc1   : > { %v973_v63 = vpop.permute.xlu0 %972  ;;  %v1235_v33 = vsel %vm1227_vm9, %v1202_v46, %v975_v57 }
  0xc2   : > { %894 = vrot.lane.b32.xlu1 %v708_v29, %s2411_s14  ;;  %v720_v20 = vsel %vm564_vm4, %v715_v7, %v719_v8  ;;  %v469_v8 = vshrl.u32 %v355_v1, 16 }
  0xc3   : > { %1114 = vrot.lane.b32.xlu0 %v825_v59, %s2414_s17 }
  0xc4   : > { %v1007_v4 = vpop.permute.xlu1 %1006 }
  0xc5   : > { %v1005_v6 = vpop.permute.xlu0 %1004  ;;  %v1268_v45 = vsel %vm1260_vm10, %v1235_v33, %v1007_v4 }
  0xc6   : > { %926 = vrot.lane.b32.xlu1 %v825_v59, %s2409_s12 }
  0xc7   : > { %924 = vrot.lane.b32.xlu0 %v2793_v10, %s2409_s12  ;;  %v1134_v10 = vsel %vm1128_vm6, %v2527_v26, %v2803_v18  ;;  %v2874_v26 = vsel %vm789_vm3, %v826_v15, %v827_v44  ;;  %v729_v18 = vshll.u32 %v559_v22, 16  ;;  %v560_v15 = vsel %vm2519_vm2, %v464_v54, 0 }
  0xc8   : > { %v1039_v9 = vpop.permute.xlu1 %1038  ;;  %v1167_v27 = vsel %vm1161_vm7, %v1134_v10, %v909_v49  ;;  %v727_v49 = vor.u32 %v726_v41, %v722_v38  ;;  %v471_v44 = vrot.slane %v469_v8, 7  ;;  %v472_v10 = vshll.u32 %v355_v1, 16  ;;  %v295_v38 = vld [vmem:[%s2510_s9 + $0xf0] sm:$0xff]  ;;  %v296_v41 = vld [vmem:[%s2510_s9 + $0xf8] sm:$0xff] }
  0xc9   : > { %v1037_v12 = vpop.permute.xlu0 %1036  ;;  %v1200_v31 = vsel %vm1194_vm8, %v1167_v27, %v941_v55  ;;  %v731_v50 = vrot.slane %v729_v18, 1  ;;  %v1301_v51 = vsel %vm1293_vm11, %v1268_v45, %v1039_v9  ;;  %v465_v55 = vshll.u32 %v354_v19, 16 }
  0xca   : > { %958 = vrot.lane.b32.xlu1 %v2836_v53, %s2407_s10  ;;  %v1233_v24 = vsel %vm1227_vm9, %v1200_v31, %v973_v63  ;;  %v741_v27 = vshll.u32 %v560_v15, 16  ;;  %v474_v19 = vor.u32 %v472_v10, %v471_v44  ;;  %v561_v33 = vsel %vm2519_vm2, %v471_v44, 0 }
  0xcb   : > { %956 = vrot.lane.b32.xlu0 %v2772_v58, %s2407_s10  ;;  %v1266_v37 = vsel %vm1260_vm10, %v1233_v24, %v1005_v6  ;;  %v467_v0 = vor.u32 %v465_v55, %v464_v54  ;;  %v830_v6 = vrot.slane %v559_v22, 1 }
  0xcc   : > { %v1071_v23 = vpop.permute.xlu1 %1070  ;;  %v1299_v36 = vsel %vm1293_vm11, %v1266_v37, %v1037_v12  ;;  %v743_v24 = vrot.slane %v741_v27, 1  ;;  %v2930_v35 = vsel %vm2519_vm2, 0, %v474_v19 }
  0xcd   : > { %v1069_v32 = vpop.permute.xlu0 %1068  ;;  %v1334_v56 = vsel %vm1326_vm12, %v1301_v51, %v1071_v23  ;;  %v2913_v7 = vsel %vm2519_vm2, 0, %v467_v0  ;;  %v831_v14 = vsel %vm789_vm3, %v829_v5, %v830_v6  ;;  %v748_v46 = vshll.u32 %v2930_v35, 16 }
  0xce   : > { %990 = vrot.lane.b32.xlu1 %v720_v20, %s2412_s15  ;;  %v1332_v47 = vsel %vm1326_vm12, %v1299_v36, %v1069_v32  ;;  %v736_v12 = vshll.u32 %v2913_v7, 16  ;;  %v832_v42 = vrot.slane %v2913_v7, 1  ;;  %v833_v36 = vrot.slane %v560_v15, 1 }
  0xcf   : > { %988 = vrot.lane.b32.xlu0 %v708_v29, %s2412_s15  ;;  %v750_v55 = vrot.slane %v748_v46, 1  ;;  %v835_v27 = vrot.slane %v2930_v35, 1 }
  0xd0   : > { %v2884_v43 = vpop.permute.xlu1 %880  ;;  %v738_v25 = vrot.slane %v736_v12, 1 }
  0xd1   : > { %v1101_v30 = vpop.permute.xlu0 %1100 }
  0xd2   : > { %v1365_v29 = vsel %vm1359_vm13, %v1332_v47, %v1101_v30  ;;  %1022 = vrot.lane.b32.xlu1 %v2874_v26, %s2410_s13 }
  0xd3   : > { %1020 = vrot.lane.b32.xlu0 %v825_v59, %s2410_s13  ;;  %2226 = vmatprep.mubr.msk.bf16.mxu0 %vm1412_vm14, %v1365_v29  ;;  %v732_v59 = vsel %vm564_vm4, %v727_v49, %v731_v50  ;;  %v356_v29 = vpack.c.bf16 %v296_v41, %v295_v38 }
  0xd4   : > { %v2896_v52 = vpop.permute.xlu1 %882 }
  0xd5   : > { %v1103_v57 = vpop.permute.xlu0 %1102  ;;  %v1140_v51 = vsel %vm1128_vm6, %v2616_v40, %v2896_v52 }
  0xd6   : > { %v1367_v28 = vsel %vm1359_vm13, %v1334_v56, %v1103_v57  ;;  %1054 = vrot.lane.b32.xlu1 %v2853_v11, %s2408_s11  ;;  %v753_v56 = vshll.u32 %v561_v33, 16 }
  0xd7   : > { %1052 = vrot.lane.b32.xlu0 %v2836_v53, %s2408_s11  ;;  %2227 = vmatmul.mubr.msk.bf16.gmra.mxu0 %vm1412_vm14, %v1367_v28  ;;  %v476_v28 = vshrl.u32 %v356_v29, 16 }
  0xd8   : > { %v915_v63 = vpop.permute.xlu1 %914  ;;  %v755_v5 = vrot.slane %v753_v56, 1 }
  0xd9   : > { %v913_v2 = vpop.permute.xlu0 %912  ;;  %v1173_v57 = vsel %vm1161_vm7, %v1140_v51, %v915_v63  ;;  %v478_v8 = vrot.slane %v476_v28, 7 }
  0xda   : > { %1086 = vrot.lane.b32.xlu1 %v732_v59, %s2413_s16 }
  0xdb   : > { %1084 = vrot.lane.b32.xlu0 %v720_v20, %s2413_s16  ;;  %v562_v38 = vsel %vm2519_vm2, %v478_v8, 0 }
  0xdc   : > { %v947_v4 = vpop.permute.xlu1 %946  ;;  %v846_v46 = vshll.u32 %v562_v38, 16 }
  0xdd   : > { %v945_v9 = vpop.permute.xlu0 %944  ;;  %v1206_v0 = vsel %vm1194_vm8, %v1173_v57, %v947_v4 }
  0xde   : > { %896 = vrot.lane.b32.xlu1 %v720_v20, %s2411_s14  ;;  %v734_v20 = vshrl.u32 %v2913_v7, 16 }
  0xdf   : > { %1116 = vrot.lane.b32.xlu0 %v2874_v26, %s2414_s17 }
  0xe0   : > { %v979_v13 = vpop.permute.xlu1 %978  ;;  %v739_v32 = vor.u32 %v738_v25, %v734_v20 }
  0xe1   : > { %v977_v22 = vpop.permute.xlu0 %976  ;;  %v1239_v40 = vsel %vm1227_vm9, %v1206_v0, %v979_v13 }
  0xe2   : > { %898 = vrot.lane.b32.xlu1 %v732_v59, %s2411_s14  ;;  %v744_v39 = vsel %vm564_vm4, %v739_v32, %v743_v24 }
  0xe3   : > { %1118 = vrot.lane.b32.xlu0 %v831_v14, %s2414_s17 }
  0xe4   : > { %v1011_v23 = vpop.permute.xlu1 %1010 }
  0xe5   : > { %v1009_v31 = vpop.permute.xlu0 %1008 }
  0xe6   : > { %930 = vrot.lane.b32.xlu1 %v831_v14, %s2409_s12 }
  0xe7   : > { %928 = vrot.lane.b32.xlu0 %v2874_v26, %s2409_s12  ;;  %v1138_v26 = vsel %vm1128_vm6, %v2593_v21, %v2884_v43  ;;  %v834_v21 = vsel %vm789_vm3, %v832_v42, %v833_v36  ;;  %v746_v43 = vshrl.u32 %v2930_v35, 16 }
  0xe8   : > { %v1043_v18 = vpop.permute.xlu1 %1042  ;;  %v1171_v47 = vsel %vm1161_vm7, %v1138_v26, %v913_v2 }
  0xe9   : > { %v1041_v37 = vpop.permute.xlu0 %1040  ;;  %v1204_v45 = vsel %vm1194_vm8, %v1171_v47, %v945_v9  ;;  %v751_v63 = vor.u32 %v750_v55, %v746_v43  ;;  %v479_v9 = vshll.u32 %v356_v29, 16 }
  0xea   : > { %962 = vrot.lane.b32.xlu1 %v2913_v7, %s2407_s10  ;;  %v1237_v50 = vsel %vm1227_vm9, %v1204_v45, %v977_v22  ;;  %v362_v22 = vmul.bf16 0.0, %v356_v29  ;;  %v848_v45 = vrot.slane %v846_v46, 1 }
  0xeb   : > { %960 = vrot.lane.b32.xlu0 %v2853_v11, %s2407_s10  ;;  %v1270_v54 = vsel %vm1260_vm10, %v1237_v50, %v1009_v31  ;;  %v481_v10 = vor.u32 %v479_v9, %v478_v8 }
  0xec   : > { %v1075_v30 = vpop.permute.xlu1 %1074  ;;  %v1303_v60 = vsel %vm1293_vm11, %v1270_v54, %v1041_v37  ;;  %v483_v31 = vshrl.u32 %v362_v22, 16  ;;  %v486_v42 = vshll.u32 %v362_v22, 16  ;;  %v853_v54 = vrot.slane %v562_v38, 1 }
  0xed   : > { %v1073_v49 = vpop.permute.xlu0 %1072  ;;  %v2985_v19 = vsel %vm2519_vm2, 0, %v481_v10 }
  0xee   : > { %994 = vrot.lane.b32.xlu1 %v744_v39, %s2412_s15  ;;  %v1336_v1 = vsel %vm1326_vm12, %v1303_v60, %v1073_v49  ;;  %v841_v24 = vshll.u32 %v2985_v19, 16  ;;  %v485_v41 = vrot.slane %v483_v31, 7  ;;  %v839_v26 = vshrl.u32 %v2985_v19, 16 }
  0xef   : > { %992 = vrot.lane.b32.xlu0 %v732_v59, %s2412_s15  ;;  %v1272_v59 = vsel %vm1260_vm10, %v1239_v40, %v1011_v23  ;;  %v836_v23 = vrot.slane %v561_v33, 1  ;;  %v852_v51 = vrot.slane %v2985_v19, 1 }
  0xf0   : > { %v2959_v62 = vpop.permute.xlu1 %884  ;;  %v1305_v6 = vsel %vm1293_vm11, %v1272_v59, %v1043_v18  ;;  %v563_v28 = vsel %vm2519_vm2, %v485_v41, 0 }
  0xf1   : > { %v1105_v2 = vpop.permute.xlu0 %1104  ;;  %v1338_v12 = vsel %vm1326_vm12, %v1305_v6, %v1075_v30  ;;  %v837_v37 = vsel %vm789_vm3, %v835_v27, %v836_v23  ;;  %v488_v30 = vor.u32 %v486_v42, %v485_v41  ;;  %v1142_v55 = vsel %vm1128_vm6, %v2650_v3, %v2959_v62 }
  0xf2   : > { %v1369_v52 = vsel %vm1359_vm13, %v1336_v1, %v1105_v2  ;;  %1026 = vrot.lane.b32.xlu1 %v834_v21, %s2410_s13  ;;  %v854_v3 = vsel %vm789_vm3, %v852_v51, %v853_v54  ;;  %v863_v59 = vshll.u32 %v563_v28, 16  ;;  %v870_v31 = vrot.slane %v563_v28, 1 }
  0xf3   : > { %1024 = vrot.lane.b32.xlu0 %v831_v14, %s2410_s13  ;;  %2230 = vmatprep.mubr.msk.bf16.mxu0 %vm1412_vm14, %v1369_v52  ;;  %v756_v14 = vsel %vm564_vm4, %v751_v63, %v755_v5  ;;  %v545_v50 = vsel %vm2519_vm2, 0, %v488_v30 }
  0xf4   : > { %v2970_v4 = vpop.permute.xlu1 %886  ;;  %v858_v56 = vshll.u32 %v545_v50, 16  ;;  %v856_v62 = vshrl.u32 %v545_v50, 16  ;;  %v869_v27 = vrot.slane %v545_v50, 1 }
  0xf5   : > { %v1107_v13 = vpop.permute.xlu0 %1106  ;;  %v1144_v40 = vsel %vm1128_vm6, %v2665_v16, %v2970_v4 }
  0xf6   : > { %v1371_v15 = vsel %vm1359_vm13, %v1338_v12, %v1107_v13  ;;  %1058 = vrot.lane.b32.xlu1 %v2930_v35, %s2408_s11  ;;  %v860_v17 = vrot.slane %v858_v56, 1 }
  0xf7   : > { %1056 = vrot.lane.b32.xlu0 %v2913_v7, %s2408_s11  ;;  %2231 = vmatmul.mubr.msk.bf16.gmra.mxu0 %vm1412_vm14, %v1371_v15 }
  0xf8   : > { %v919_v44 = vpop.permute.xlu1 %918  ;;  %v861_v15 = vor.u32 %v860_v17, %v856_v62 }
  0xf9   : > { %v917_v20 = vpop.permute.xlu0 %916  ;;  %v1177_v63 = vsel %vm1161_vm7, %v1144_v40, %v919_v44 }
  0xfa   : > { %1090 = vrot.lane.b32.xlu1 %v756_v14, %s2413_s16  ;;  %v1175_v57 = vsel %vm1161_vm7, %v1142_v55, %v917_v20 }
  0xfb   : > { %1088 = vrot.lane.b32.xlu0 %v744_v39, %s2413_s16 }
  0xfc   : > { %v951_v25 = vpop.permute.xlu1 %950 }
  0xfd   : > { %v949_v32 = vpop.permute.xlu0 %948  ;;  %v1210_v8 = vsel %vm1194_vm8, %v1177_v63, %v951_v25 }
  0xfe   : > { %900 = vrot.lane.b32.xlu1 %v744_v39, %s2411_s14  ;;  %v843_v39 = vrot.slane %v841_v24, 1  ;;  %v1208_v0 = vsel %vm1194_vm8, %v1175_v57, %v949_v32 }
  0xff   : > { %1120 = vrot.lane.b32.xlu0 %v834_v21, %s2414_s17 }
 0x100   : > { %v983_v18 = vpop.permute.xlu1 %982  ;;  %v844_v29 = vor.u32 %v843_v39, %v839_v26 }
 0x101   : > { %v981_v36 = vpop.permute.xlu0 %980  ;;  %v1243_v13 = vsel %vm1227_vm9, %v1210_v8, %v983_v18  ;;  %v871_v18 = vsel %vm789_vm3, %v869_v27, %v870_v31 }
 0x102   : > { %902 = vrot.lane.b32.xlu1 %v756_v14, %s2411_s14  ;;  %v1241_v2 = vsel %vm1227_vm9, %v1208_v0, %v981_v36  ;;  %s2160_s14 = sshll.u32 %s2397_s21, 5  ;;  %s2333_s21 = sshll.u32 %s2416_s27, 4  ;;  %s2334_s21 = int_to_ptr.vmem [resolvable:$false] %s2333_s21 }
 0x103   : > { %1122 = vrot.lane.b32.xlu0 %v837_v37, %s2414_s17  ;;  %s1979_s3 = scalar_lea.hbm %s3315_s5, %s2160_s14  ;;  %s2335_s6 = scalar_lea.vmem %s2334_s21, 64 }
 0x104   : > { %v1015_v47 = vpop.permute.xlu1 %1014 }
 0x105   : > { %v1013_v33 = vpop.permute.xlu0 %1012  ;;  %v1276_v4 = vsel %vm1260_vm10, %v1243_v13, %v1015_v47 }
 0x106   : > { %934 = vrot.lane.b32.xlu1 %v837_v37, %s2409_s12  ;;  %v1274_v52 = vsel %vm1260_vm10, %v1241_v2, %v1013_v33 }
 0x107   : > { %932 = vrot.lane.b32.xlu0 %v834_v21, %s2409_s12  ;;  %v849_v21 = vsel %vm564_vm4, %v844_v29, %v848_v45  ;;  %s2101_s12 = sshll.u32 %s242_s30, 1 }
 0x108   : > { %v1047_v49 = vpop.permute.xlu1 %1046 }
 0x109   : > { %v1045_v43 = vpop.permute.xlu0 %1044  ;;  %v1309_v44 = vsel %vm1293_vm11, %v1276_v4, %v1047_v49 }
 0x10a   : > { %966 = vrot.lane.b32.xlu1 %v2985_v19, %s2407_s10  ;;  %v1307_v5 = vsel %vm1293_vm11, %v1274_v52, %v1045_v43 }
 0x10b   : > { %964 = vrot.lane.b32.xlu0 %v2930_v35, %s2407_s10 }
 0x10c   : > { %v1079_v60 = vpop.permute.xlu1 %1078 }
 0x10d   : > { %v1077_v1 = vpop.permute.xlu0 %1076  ;;  %v1342_v22 = vsel %vm1326_vm12, %v1309_v44, %v1079_v60 }
 0x10e   : > { %998 = vrot.lane.b32.xlu1 %v849_v21, %s2412_s15  ;;  %v1340_v9 = vsel %vm1326_vm12, %v1307_v5, %v1077_v1 }
 0x10f   : > { %996 = vrot.lane.b32.xlu0 %v756_v14, %s2412_s15  ;;  %v865_v14 = vrot.slane %v863_v59, 1 }
 0x110   : > { %v889_v6 = vpop.permute.xlu1 %888 }
 0x111   : > { %v1109_v12 = vpop.permute.xlu0 %1108  ;;  %v866_v23 = vsel %vm564_vm4, %v861_v15, %v865_v14  ;;  %v1146_v46 = vsel %vm1128_vm6, %v2696_v48, %v889_v6 }
 0x112   : > { %v1373_v16 = vsel %vm1359_vm13, %v1340_v9, %v1109_v12  ;;  %1030 = vrot.lane.b32.xlu1 %v854_v3, %s2410_s13 }
 0x113   : > { %1028 = vrot.lane.b32.xlu0 %v837_v37, %s2410_s13  ;;  %2234 = vmatprep.mubr.msk.bf16.mxu0 %vm1412_vm14, %v1373_v16  ;;  %s3197_s13 = scalar_lea.vmem [#allocation2], %s2101_s12 }
 0x114   : > { %v891_v10 = vpop.permute.xlu1 %890  ;;  %s1981_s15 = sshll.u32 %s3197_s13, 4  ;;  %s1982_s15 = int_to_ptr.vmem [resolvable:$true] %s1981_s15 }
 0x115   : > { %v1111_v20 = vpop.permute.xlu0 %1110  ;;  %v1148_v49 = vsel %vm1128_vm6, %v2711_v61, %v891_v10  ;;  %s2329_s25 = scalar_lea.vmem %s1982_s15, 32  ;;  %p2336_p1 = scmp.lt.s32.totalorder %s1982_s15, %s2334_s21 }
 0x116   : > { %v1375_v25 = vsel %vm1359_vm13, %v1342_v22, %v1111_v20  ;;  %1062 = vrot.lane.b32.xlu1 %v545_v50, %s2408_s11  ;;  %p2330_p12 = scmp.ne.s32.totalorder %s1982_s15, %s2329_s25  ;;  %p2337_p2 = scmp.lt.s32.totalorder %s2335_s6, %s2329_s25 }
 0x117   : > { %1060 = vrot.lane.b32.xlu0 %v2985_v19, %s2408_s11  ;;  %2235 = vmatmul.mubr.msk.bf16.gmra.mxu0 %vm1412_vm14, %v1375_v25  ;;  %s3107_s11 = scalar_lea.vmem %s3314_s4, %s2164_s8 }
 0x118   : > { %v923_v32 = vpop.permute.xlu1 %922  ;;  %p2331_p13 = pnand %p2330_p12, %p2487_p4  ;;  %p2338_p3 = por %p2337_p2, %p2336_p1 }
 0x119   : > { %v921_v24 = vpop.permute.xlu0 %920  ;;  %v1181_v43 = vsel %vm1161_vm7, %v1148_v49, %v923_v32 }
 0x11a   : > { %1094 = vrot.lane.b32.xlu1 %v866_v23, %s2413_s16  ;;  %v1179_v47 = vsel %vm1161_vm7, %v1146_v46, %v921_v24  ;;  %p2332_p0 = pneg %p2331_p13 }
 0x11b   : > { %1092 = vrot.lane.b32.xlu0 %v849_v21, %s2413_s16 }
 0x11c   : > { %v955_v37 = vpop.permute.xlu1 %954  ;;  %p2339_p5 = pnand %p2338_p3, %p2332_p0 }
 0x11d   : > { %v953_v38 = vpop.permute.xlu0 %952  ;;  %v1214_v48 = vsel %vm1194_vm8, %v1181_v43, %v955_v37 }
 0x11e   : > { %1126 = vrot.lane.b32.xlu1 %v871_v18, %s2414_s17  ;;  %v1212_v33 = vsel %vm1194_vm8, %v1179_v47, %v953_v38 }
 0x11f   : > { %1124 = vrot.lane.b32.xlu0 %v854_v3, %s2414_s17 }
 0x120   : > { %v987_v19 = vpop.permute.xlu1 %986 }
 0x121   : > { %v985_v41 = vpop.permute.xlu0 %984  ;;  %v1247_v56 = vsel %vm1227_vm9, %v1214_v48, %v987_v19 }
 0x122   : > { %v1245_v45 = vsel %vm1227_vm9, %v1212_v33, %v985_v41 }
 0x124   : > { %v1019_v42 = vpop.permute.xlu1 %1018 }
 0x125   : > { %v1017_v36 = vpop.permute.xlu0 %1016  ;;  %v1280_v60 = vsel %vm1260_vm10, %v1247_v56, %v1019_v42 }
 0x126   : > { %v1278_v50 = vsel %vm1260_vm10, %v1245_v45, %v1017_v36 }
 0x128   : > { %v1051_v26 = vpop.permute.xlu1 %1050 }
 0x129   : > { %v1049_v39 = vpop.permute.xlu0 %1048  ;;  %v1313_v61 = vsel %vm1293_vm11, %v1280_v60, %v1051_v26 }
 0x12a   : > { %v1311_v51 = vsel %vm1293_vm11, %v1278_v50, %v1049_v39 }
 0x12c   : > { %v1083_v30 = vpop.permute.xlu1 %1082 }
 0x12d   : > { %v1081_v29 = vpop.permute.xlu0 %1080  ;;  %v1346_v0 = vsel %vm1326_vm12, %v1313_v61, %v1083_v30 }
 0x12e   : > { %v1344_v55 = vsel %vm1326_vm12, %v1311_v51, %v1081_v29 }
 0x130   : > { %v893_v54 = vpop.permute.xlu1 %892 }
 0x131   : > { %v1113_v21 = vpop.permute.xlu0 %1112  ;;  %v1150_v9 = vsel %vm1128_vm6, %v2751_v34, %v893_v54 }
 0x132   : > { %v1377_v57 = vsel %vm1359_vm13, %v1344_v55, %v1113_v21 }
 0x133   : > { %2238 = vmatprep.mubr.msk.bf16.mxu1 %vm1412_vm14, %v1377_v57 }
 0x134   : > { %v895_v28 = vpop.permute.xlu1 %894 }
 0x135   : > { %v1115_v1 = vpop.permute.xlu0 %1114  ;;  %v1152_v14 = vsel %vm1128_vm6, %v2772_v58, %v895_v28 }
 0x136   : > { %v1379_v2 = vsel %vm1359_vm13, %v1346_v0, %v1115_v1 }
 0x137   : > { %2239 = vmatmul.mubr.msk.bf16.vlgmr.msra.gmra.mxu1 %vm1412_vm14, %v1379_v2 }
 0x138   : > { %v927_v3 = vpop.permute.xlu1 %926 }
 0x139   : > { %v925_v62 = vpop.permute.xlu0 %924  ;;  %v1185_v10 = vsel %vm1161_vm7, %v1152_v14, %v927_v3 }
 0x13a   : > { %v1183_v12 = vsel %vm1161_vm7, %v1150_v9, %v925_v62 }
 0x13c   : > { %v959_v40 = vpop.permute.xlu1 %958 }
 0x13d   : > { %v957_v52 = vpop.permute.xlu0 %956  ;;  %v1218_v34 = vsel %vm1194_vm8, %v1185_v10, %v959_v40 }
 0x13e   : > { %v1216_v16 = vsel %vm1194_vm8, %v1183_v12, %v957_v52 }
 0x140   : > { %v991_v17 = vpop.permute.xlu1 %990 }
 0x141   : > { %v989_v59 = vpop.permute.xlu0 %988  ;;  %v1251_v23 = vsel %vm1227_vm9, %v1218_v34, %v991_v17 }
 0x142   : > { %v1249_v15 = vsel %vm1227_vm9, %v1216_v16, %v989_v59 }
 0x144   : > { %v1023_v63 = vpop.permute.xlu1 %1022 }
 0x145   : > { %v1021_v5 = vpop.permute.xlu0 %1020  ;;  %v1284_v32 = vsel %vm1260_vm10, %v1251_v23, %v1023_v63 }
 0x146   : > { %v1282_v44 = vsel %vm1260_vm10, %v1249_v15, %v1021_v5 }
 0x148   : > { %v1055_v6 = vpop.permute.xlu1 %1054 }
 0x149   : > { %v1053_v8 = vpop.permute.xlu0 %1052  ;;  %v1317_v58 = vsel %vm1293_vm11, %v1284_v32, %v1055_v6 }
 0x14a   : > { %v1315_v22 = vsel %vm1293_vm11, %v1282_v44, %v1053_v8 }
 0x14c   : > { %v1087_v13 = vpop.permute.xlu1 %1086 }
 0x14d   : > { %v1085_v4 = vpop.permute.xlu0 %1084  ;;  %v1350_v18 = vsel %vm1326_vm12, %v1317_v58, %v1087_v13 }
 0x14e   : > { %v1348_v25 = vsel %vm1326_vm12, %v1315_v22, %v1085_v4 }
 0x150   : > { %v897_v20 = vpop.permute.xlu1 %896 }
 0x151   : > { %v1117_v27 = vpop.permute.xlu0 %1116  ;;  %v1154_v29 = vsel %vm1128_vm6, %v2836_v53, %v897_v20 }
 0x152   : > { %v1381_v31 = vsel %vm1359_vm13, %v1348_v25, %v1117_v27 }
 0x153   : > { %2242 = vmatprep.mubr.msk.bf16.mxu1 %vm1412_vm14, %v1381_v31 }
 0x154   : > { %v899_v24 = vpop.permute.xlu1 %898 }
 0x155   : > { %v1119_v37 = vpop.permute.xlu0 %1118  ;;  %v1156_v54 = vsel %vm1128_vm6, %v2853_v11, %v899_v24 }
 0x156   : > { %v1383_v38 = vsel %vm1359_vm13, %v1350_v18, %v1119_v37 }
 0x157   : > { %2243 = vmatmul.mubr.msk.bf16.gmra.mxu1 %vm1412_vm14, %v1383_v38 }
 0x158   : > { %v931_v19 = vpop.permute.xlu1 %930 }
 0x159   : > { %v929_v41 = vpop.permute.xlu0 %928  ;;  %v1189_v55 = vsel %vm1161_vm7, %v1156_v54, %v931_v19 }
 0x15a   : > { %v1187_v45 = vsel %vm1161_vm7, %v1154_v29, %v929_v41 }
 0x15c   : > { %v963_v42 = vpop.permute.xlu1 %962 }
 0x15d   : > { %v961_v36 = vpop.permute.xlu0 %960  ;;  %v1222_v53 = vsel %vm1194_vm8, %v1189_v55, %v963_v42 }
 0x15e   : > { %v1220_v50 = vsel %vm1194_vm8, %v1187_v45, %v961_v36 }
 0x160   : > { %v995_v26 = vpop.permute.xlu1 %994 }
 0x161   : > { %v993_v39 = vpop.permute.xlu0 %992  ;;  %v1255_v61 = vsel %vm1227_vm9, %v1222_v53, %v995_v26 }
 0x162   : > { %v1253_v51 = vsel %vm1227_vm9, %v1220_v50, %v993_v39 }
 0x164   : > { %v1027_v46 = vpop.permute.xlu1 %1026 }
 0x165   : > { %v1025_v47 = vpop.permute.xlu0 %1024  ;;  %v1288_v0 = vsel %vm1260_vm10, %v1255_v61, %v1027_v46 }
 0x166   : > { %v1286_v48 = vsel %vm1260_vm10, %v1253_v51, %v1025_v47 }
 0x168   : > { %v1059_v30 = vpop.permute.xlu1 %1058 }
 0x169   : > { %v1057_v33 = vpop.permute.xlu0 %1056  ;;  %v1321_v11 = vsel %vm1293_vm11, %v1288_v0, %v1059_v30 }
 0x16a   : > { %v1319_v21 = vsel %vm1293_vm11, %v1286_v48, %v1057_v33 }
 0x16c   : > { %v1091_v49 = vpop.permute.xlu1 %1090 }
 0x16d   : > { %v1089_v43 = vpop.permute.xlu0 %1088  ;;  %v1354_v2 = vsel %vm1326_vm12, %v1321_v11, %v1091_v49 }
 0x16e   : > { %v1352_v57 = vsel %vm1326_vm12, %v1319_v21, %v1089_v43 }
 0x170   : > { %v901_v56 = vpop.permute.xlu1 %900 }
 0x171   : > { %v1121_v60 = vpop.permute.xlu0 %1120  ;;  %v1158_v47 = vsel %vm1128_vm6, %v2913_v7, %v901_v56 }
 0x172   : > { %v1385_v28 = vsel %vm1359_vm13, %v1352_v57, %v1121_v60 }
 0x173   : > { %2246 = vmatprep.mubr.msk.bf16.mxu1 %vm1412_vm14, %v1385_v28 }
 0x174   : > { %v903_v1 = vpop.permute.xlu1 %902 }
 0x175   : > { %v1123_v3 = vpop.permute.xlu0 %1122  ;;  %v1160_v46 = vsel %vm1128_vm6, %v2930_v35, %v903_v1 }
 0x176   : > { %v1387_v62 = vsel %vm1359_vm13, %v1354_v2, %v1123_v3 }
 0x177   : > { %v2224_v40 = vpop.f32.mrf.mxu0  ;;  %2247 = vmatmul.mubr.msk.bf16.gmra.mxu1 %vm1412_vm14, %v1387_v62 }
 0x178   : > { %v2167_v52 = vpack.c.bf16 %v2224_v40, %v2224_v40  ;;  %v935_v17 = vpop.permute.xlu1 %934  ;;  %v1681_v13 = vmul.f32 %v2224_v40, %v2224_v40  ;;  %v1613_v20 = vsel %vm1161_vm7, %v2224_v40, 0.0 }
 0x179   : > { %v1483_v59 = vpop.f32.mrf.mxu0  ;;  %v933_v63 = vpop.permute.xlu0 %932  ;;  %v1193_v30 = vsel %vm1161_vm7, %v1160_v46, %v935_v17 }
 0x17a   : > { %1923 = vst.msk [vmem:[%s3107_s11 + $0x8] sm:$0xf] %vm1920_vm15, %v2167_v52  ;;  %v2165_v5 = vpack.c.bf16 %v1483_v59, %v1483_v59  ;;  %v1679_v8 = vmul.f32 %v1483_v59, %v1483_v59  ;;  %v1610_v15 = vsel %vm1161_vm7, %v1483_v59, 0.0  ;;  %v1714_v24 = vsel %vm1161_vm7, %v1681_v13, 0.0 }
 0x17b   : > { %v2225_v6 = vpop.f32.mrf.mxu0  ;;  %v1191_v33 = vsel %vm1161_vm7, %v1158_v47, %v933_v63 }
 0x17c   : > { %1921 = vst.msk [vmem:[%s3107_s11] sm:$0xf] %vm1920_vm15, %v2165_v5  ;;  %v2168_v9 = vpack.c.bf16 %v2225_v6, %v2225_v6  ;;  %v967_v12 = vpop.permute.xlu1 %966  ;;  %v1711_v34 = vsel %vm1161_vm7, %v1679_v8, 0.0  ;;  %v1682_v25 = vmul.f32 %v2225_v6, %v2225_v6  ;;  %v1615_v18 = vsel %vm1161_vm7, %v2225_v6, 0.0 }
 0x17d   : > { %v1486_v16 = vpop.f32.mrf.mxu0  ;;  %v965_v4 = vpop.permute.xlu0 %964  ;;  %v1226_v29 = vsel %vm1194_vm8, %v1193_v30, %v967_v12 }
 0x17e   : > { %1924 = vst.msk [vmem:[%s3107_s11 + $0xc] sm:$0xf] %vm1920_vm15, %v2168_v9  ;;  %v1611_v14 = vsel %vm1161_vm7, %v1486_v16, 0.0  ;;  %v1680_v44 = vmul.f32 %v1486_v16, %v1486_v16  ;;  %v2166_v10 = vpack.c.bf16 %v1486_v16, %v1486_v16  ;;  %v1716_v19 = vsel %vm1161_vm7, %v1682_v25, 0.0 }
 0x17f   : > { %v1612_v22 = vadd.f32 %v1611_v14, %v1610_v15  ;;  %v1224_v49 = vsel %vm1194_vm8, %v1191_v33, %v965_v4 }
 0x180   : > { %v1712_v27 = vsel %vm1161_vm7, %v1680_v44, 0.0  ;;  %1922 = vst.msk [vmem:[%s3107_s11 + $0x4] sm:$0xf] %vm1920_vm15, %v2166_v10  ;;  %v999_v23 = vpop.permute.xlu1 %998 }
 0x181   : > { %v1614_v31 = vadd.f32 %v1613_v20, %v1612_v22  ;;  %v1713_v32 = vadd.f32 %v1712_v27, %v1711_v34  ;;  %v997_v58 = vpop.permute.xlu0 %996  ;;  %v1259_v50 = vsel %vm1227_vm9, %v1226_v29, %v999_v23 }
 0x182   : > { %v1257_v51 = vsel %vm1227_vm9, %v1224_v49, %v997_v58 }
 0x183   : > { %v1715_v37 = vadd.f32 %v1714_v24, %v1713_v32  ;;  %v1616_v38 = vadd.f32 %v1615_v18, %v1614_v31 }
 0x184   : > { %v1031_v41 = vpop.permute.xlu1 %1030 }
 0x185   : > { %v1029_v42 = vpop.permute.xlu0 %1028  ;;  %v1717_v36 = vadd.f32 %v1716_v19, %v1715_v37  ;;  %v1292_v35 = vsel %vm1260_vm10, %v1259_v50, %v1031_v41 }
 0x186   : > { %v1290_v54 = vsel %vm1260_vm10, %v1257_v51, %v1029_v42 }
 0x188   : > { %v1063_v26 = vpop.permute.xlu1 %1062 }
 0x189   : > { %v1061_v39 = vpop.permute.xlu0 %1060  ;;  %v1325_v7 = vsel %vm1293_vm11, %v1292_v35, %v1063_v26 }
 0x18a   : > { %v1323_v48 = vsel %vm1293_vm11, %v1290_v54, %v1061_v39 }
 0x18c   : > { %v1095_v45 = vpop.permute.xlu1 %1094 }
 0x18d   : > { %v1093_v43 = vpop.permute.xlu0 %1092  ;;  %v1358_v55 = vsel %vm1326_vm12, %v1325_v7, %v1095_v45 }
 0x18e   : > { %v1356_v56 = vsel %vm1326_vm12, %v1323_v48, %v1093_v43 }
 0x190   : > { %v1127_v21 = vpop.permute.xlu1 %1126 }
 0x191   : > { %v1391_v53 = vsel %vm1359_vm13, %v1358_v55, %v1127_v21  ;;  %v1125_v57 = vpop.permute.xlu0 %1124 }
 0x192   : > { %v1389_v60 = vsel %vm1359_vm13, %v1356_v56, %v1125_v57 }
 0x193   : > { %2250 = vmatprep.mubr.msk.bf16.mxu1 %vm1412_vm14, %v1389_v60 }
 0x194   : > { %2251 = vmatmul.mubr.msk.bf16.gmra.mxu1 %vm1412_vm14, %v1391_v53 }
 0x197   : > { %v2228_v61 = vpop.f32.mrf.mxu0 }
 0x198   : > { %v2171_v28 = vpack.c.bf16 %v2228_v61, %v2228_v61  ;;  %v1685_v63 = vmul.f32 %v2228_v61, %v2228_v61  ;;  %v1621_v12 = vsel %vm1161_vm7, %v2228_v61, 0.0 }
 0x199   : > { %v1499_v0 = vpop.f32.mrf.mxu0 }
 0x19a   : > { %1927 = vst.msk [vmem:[%s3107_s11 + $0x18] sm:$0xf] %vm1920_vm15, %v2171_v28  ;;  %v1617_v11 = vsel %vm1161_vm7, %v1499_v0, 0.0  ;;  %v1683_v1 = vmul.f32 %v1499_v0, %v1499_v0  ;;  %v2169_v2 = vpack.c.bf16 %v1499_v0, %v1499_v0  ;;  %v1722_v14 = vsel %vm1161_vm7, %v1685_v63, 0.0 }
 0x19b   : > { %v1618_v3 = vadd.f32 %v1617_v11, %v1616_v38  ;;  %v2229_v62 = vpop.f32.mrf.mxu0 }
 0x19c   : > { %v1718_v40 = vsel %vm1161_vm7, %v1683_v1, 0.0  ;;  %1925 = vst.msk [vmem:[%s3107_s11 + $0x10] sm:$0xf] %vm1920_vm15, %v2169_v2  ;;  %v2172_v52 = vpack.c.bf16 %v2229_v62, %v2229_v62  ;;  %v1686_v13 = vmul.f32 %v2229_v62, %v2229_v62  ;;  %v1623_v44 = vsel %vm1161_vm7, %v2229_v62, 0.0 }
 0x19d   : > { %v1719_v17 = vadd.f32 %v1718_v40, %v1717_v36  ;;  %v1502_v59 = vpop.f32.mrf.mxu0 }
 0x19e   : > { %1928 = vst.msk [vmem:[%s3107_s11 + $0x1c] sm:$0xf] %vm1920_vm15, %v2172_v52  ;;  %v1619_v5 = vsel %vm1161_vm7, %v1502_v59, 0.0  ;;  %v1684_v6 = vmul.f32 %v1502_v59, %v1502_v59  ;;  %v2170_v8 = vpack.c.bf16 %v1502_v59, %v1502_v59  ;;  %v1724_v20 = vsel %vm1161_vm7, %v1686_v13, 0.0 }
 0x19f   : > { %v1620_v9 = vadd.f32 %v1619_v5, %v1618_v3 }
 0x1a0   : > { %v1720_v16 = vsel %vm1161_vm7, %v1684_v6, 0.0  ;;  %1926 = vst.msk [vmem:[%s3107_s11 + $0x14] sm:$0xf] %vm1920_vm15, %v2170_v8 }
 0x1a1   : > { %v1622_v4 = vadd.f32 %v1621_v12, %v1620_v9  ;;  %v1721_v15 = vadd.f32 %v1720_v16, %v1719_v17 }
 0x1a3   : > { %v1723_v10 = vadd.f32 %v1722_v14, %v1721_v15  ;;  %v1624_v22 = vadd.f32 %v1623_v44, %v1622_v4  ;;  %v2415_v4 = vmov 0.0  }
 0x1a4   : > { %1787 = vst.msk [vmem:[%s3197_s13] sm:$0x3] %vm1786_vm1, %v2415_v4 }
 0x1a5   : > { %v1725_v34 = vadd.f32 %v1724_v20, %v1723_v10 }
 0x1b7   : > { %v2232_v25 = vpop.f32.mrf.mxu0 }
 0x1b8   : > { %v2175_v27 = vpack.c.bf16 %v2232_v25, %v2232_v25  ;;  %v1689_v42 = vmul.f32 %v2232_v25, %v2232_v25  ;;  %v1629_v47 = vsel %vm1161_vm7, %v2232_v25, 0.0 }
 0x1b9   : > { %v1515_v23 = vpop.f32.mrf.mxu0 }
 0x1ba   : > { %1931 = vst.msk [vmem:[%s3107_s11 + $0x28] sm:$0xf] %vm1920_vm15, %v2175_v27  ;;  %v1625_v31 = vsel %vm1161_vm7, %v1515_v23, 0.0  ;;  %v1687_v32 = vmul.f32 %v1515_v23, %v1515_v23  ;;  %v2173_v58 = vpack.c.bf16 %v1515_v23, %v1515_v23  ;;  %v1730_v49 = vsel %vm1161_vm7, %v1689_v42, 0.0 }
 0x1bb   : > { %v1626_v24 = vadd.f32 %v1625_v31, %v1624_v22  ;;  %v2233_v18 = vpop.f32.mrf.mxu0 }
 0x1bc   : > { %v1726_v37 = vsel %vm1161_vm7, %v1687_v32, 0.0  ;;  %1929 = vst.msk [vmem:[%s3107_s11 + $0x20] sm:$0xf] %vm1920_vm15, %v2173_v58  ;;  %v2176_v38 = vpack.c.bf16 %v2233_v18, %v2233_v18  ;;  %v1690_v30 = vmul.f32 %v2233_v18, %v2233_v18  ;;  %v1631_v50 = vsel %vm1161_vm7, %v2233_v18, 0.0 }
 0x1bd   : > { %v1727_v19 = vadd.f32 %v1726_v37, %v1725_v34  ;;  %v1518_v41 = vpop.f32.mrf.mxu0 }
 0x1be   : > { %1932 = vst.msk [vmem:[%s3107_s11 + $0x2c] sm:$0xf] %vm1920_vm15, %v2176_v38  ;;  %v1627_v36 = vsel %vm1161_vm7, %v1518_v41, 0.0  ;;  %v1688_v26 = vmul.f32 %v1518_v41, %v1518_v41  ;;  %v2174_v39 = vpack.c.bf16 %v1518_v41, %v1518_v41  ;;  %v1732_v35 = vsel %vm1161_vm7, %v1690_v30, 0.0 }
 0x1bf   : > { %v1628_v46 = vadd.f32 %v1627_v36, %v1626_v24 }
 0x1c0   : > { %v1728_v33 = vsel %vm1161_vm7, %v1688_v26, 0.0  ;;  %1930 = vst.msk [vmem:[%s3107_s11 + $0x24] sm:$0xf] %vm1920_vm15, %v2174_v39 }
 0x1c1   : > { %v1630_v29 = vadd.f32 %v1629_v47, %v1628_v46  ;;  %v1729_v45 = vadd.f32 %v1728_v33, %v1727_v19 }
 0x1c3   : > { %v1731_v43 = vadd.f32 %v1730_v49, %v1729_v45  ;;  %v1632_v51 = vadd.f32 %v1631_v50, %v1630_v29 }
 0x1c5   : > { %v1733_v54 = vadd.f32 %v1732_v35, %v1731_v43 }
 0x1d7   : > { %v2236_v7 = vpop.f32.mrf.mxu0 }
 0x1d8   : > { %v2179_v48 = vpack.c.bf16 %v2236_v7, %v2236_v7  ;;  %v1693_v1 = vmul.f32 %v2236_v7, %v2236_v7  ;;  %v1637_v52 = vsel %vm1161_vm7, %v2236_v7, 0.0 }
 0x1d9   : > { %v1531_v55 = vpop.f32.mrf.mxu0 }
 0x1da   : > { %1935 = vst.msk [vmem:[%s3107_s11 + $0x38] sm:$0xf] %vm1920_vm15, %v2179_v48  ;;  %v1633_v21 = vsel %vm1161_vm7, %v1531_v55, 0.0  ;;  %v1691_v56 = vmul.f32 %v1531_v55, %v1531_v55  ;;  %v2177_v53 = vpack.c.bf16 %v1531_v55, %v1531_v55  ;;  %v1738_v6 = vsel %vm1161_vm7, %v1693_v1, 0.0 }
 0x1db   : > { %v1634_v57 = vadd.f32 %v1633_v21, %v1632_v51  ;;  %v2237_v60 = vpop.f32.mrf.mxu0 }
 0x1dc   : > { %v1734_v61 = vsel %vm1161_vm7, %v1691_v56, 0.0  ;;  %1933 = vst.msk [vmem:[%s3107_s11 + $0x30] sm:$0xf] %vm1920_vm15, %v2177_v53  ;;  %v2180_v28 = vpack.c.bf16 %v2237_v60, %v2237_v60  ;;  %v1694_v17 = vmul.f32 %v2237_v60, %v2237_v60  ;;  %v1639_v8 = vsel %vm1161_vm7, %v2237_v60, 0.0 }
 0x1dd   : > { %v1735_v0 = vadd.f32 %v1734_v61, %v1733_v54  ;;  %v1534_v11 = vpop.f32.mrf.mxu0 }
 0x1de   : > { %1936 = vst.msk [vmem:[%s3107_s11 + $0x3c] sm:$0xf] %vm1920_vm15, %v2180_v28  ;;  %v1635_v2 = vsel %vm1161_vm7, %v1534_v11, 0.0  ;;  %v1692_v3 = vmul.f32 %v1534_v11, %v1534_v11  ;;  %v2178_v62 = vpack.c.bf16 %v1534_v11, %v1534_v11  ;;  %v1740_v13 = vsel %vm1161_vm7, %v1694_v17, 0.0 }
 0x1df   : > { %v1636_v40 = vadd.f32 %v1635_v2, %v1634_v57 }
 0x1e0   : > { %v1736_v59 = vsel %vm1161_vm7, %v1692_v3, 0.0  ;;  %1934 = vst.msk [vmem:[%s3107_s11 + $0x34] sm:$0xf] %vm1920_vm15, %v2178_v62 }
 0x1e1   : > { %v1638_v63 = vadd.f32 %v1637_v52, %v1636_v40  ;;  %v1737_v5 = vadd.f32 %v1736_v59, %v1735_v0 }
 0x1e3   : > { %v1739_v9 = vadd.f32 %v1738_v6, %v1737_v5  ;;  %v1640_v12 = vadd.f32 %v1639_v8, %v1638_v63 }
 0x1e5   : > { %v1741_v16 = vadd.f32 %v1740_v13, %v1739_v9 }
 0x1f7   : > { %v2240_v15 = vpop.f32.mrf.mxu1 }
 0x1f8   : > { %v2183_v14 = vpack.c.bf16 %v2240_v15, %v2240_v15  ;;  %v1697_v58 = vmul.f32 %v2240_v15, %v2240_v15  ;;  %v1645_v19 = vsel %vm1161_vm7, %v2240_v15, 0.0 }
 0x1f9   : > { %v1547_v44 = vpop.f32.mrf.mxu1 }
 0x1fa   : > { %1939 = vst.msk [vmem:[%s3107_s11 + $0x48] sm:$0xf] %vm1920_vm15, %v2183_v14  ;;  %v1641_v10 = vsel %vm1161_vm7, %v1547_v44, 0.0  ;;  %v1695_v22 = vmul.f32 %v1547_v44, %v1547_v44  ;;  %v2181_v20 = vpack.c.bf16 %v1547_v44, %v1547_v44  ;;  %v1746_v39 = vsel %vm1161_vm7, %v1697_v58, 0.0 }
 0x1fb   : > { %v1642_v34 = vadd.f32 %v1641_v10, %v1640_v12  ;;  %v2241_v25 = vpop.f32.mrf.mxu1 }
 0x1fc   : > { %v1742_v27 = vsel %vm1161_vm7, %v1695_v22, 0.0  ;;  %1937 = vst.msk [vmem:[%s3107_s11 + $0x40] sm:$0xf] %vm1920_vm15, %v2181_v20  ;;  %v2184_v23 = vpack.c.bf16 %v2241_v25, %v2241_v25  ;;  %v1698_v41 = vmul.f32 %v2241_v25, %v2241_v25  ;;  %v1647_v46 = vsel %vm1161_vm7, %v2241_v25, 0.0 }
 0x1fd   : > { %v1743_v31 = vadd.f32 %v1742_v27, %v1741_v16  ;;  %v1550_v32 = vpop.f32.mrf.mxu1 }
 0x1fe   : > { %1940 = vst.msk [vmem:[%s3107_s11 + $0x4c] sm:$0xf] %vm1920_vm15, %v2184_v23  ;;  %v1643_v24 = vsel %vm1161_vm7, %v1550_v32, 0.0  ;;  %v1696_v18 = vmul.f32 %v1550_v32, %v1550_v32  ;;  %v2182_v37 = vpack.c.bf16 %v1550_v32, %v1550_v32  ;;  %v1748_v33 = vsel %vm1161_vm7, %v1698_v41, 0.0 }
 0x1ff   : > { %v1644_v38 = vadd.f32 %v1643_v24, %v1642_v34 }
 0x200   : > { %v1744_v42 = vsel %vm1161_vm7, %v1696_v18, 0.0  ;;  %1938 = vst.msk [vmem:[%s3107_s11 + $0x44] sm:$0xf] %vm1920_vm15, %v2182_v37 }
 0x201   : > { %v1646_v36 = vadd.f32 %v1645_v19, %v1644_v38  ;;  %v1745_v26 = vadd.f32 %v1744_v42, %v1743_v31 }
 0x203   : > { %v1747_v47 = vadd.f32 %v1746_v39, %v1745_v26  ;;  %v1648_v30 = vadd.f32 %v1647_v46, %v1646_v36 }
 0x205   : > { %v1749_v29 = vadd.f32 %v1748_v33, %v1747_v47 }
 0x217   : > { %v2244_v45 = vpop.f32.mrf.mxu1 }
 0x218   : > { %v2187_v49 = vpack.c.bf16 %v2244_v45, %v2244_v45  ;;  %v1701_v17 = vmul.f32 %v2244_v45, %v2244_v45  ;;  %v1653_v63 = vsel %vm1161_vm7, %v2244_v45, 0.0 }
 0x219   : > { %v1563_v50 = vpop.f32.mrf.mxu1 }
 0x21a   : > { %1943 = vst.msk [vmem:[%s3107_s11 + $0x58] sm:$0xf] %vm1920_vm15, %v2187_v49  ;;  %v2185_v43 = vpack.c.bf16 %v1563_v50, %v1563_v50  ;;  %v1699_v60 = vmul.f32 %v1563_v50, %v1563_v50  ;;  %v1649_v0 = vsel %vm1161_vm7, %v1563_v50, 0.0  ;;  %v1754_v6 = vsel %vm1161_vm7, %v1701_v17, 0.0 }
 0x21b   : > { %v2245_v51 = vpop.f32.mrf.mxu1  ;;  %v1650_v3 = vadd.f32 %v1649_v0, %v1648_v30 }
 0x21c   : > { %1941 = vst.msk [vmem:[%s3107_s11 + $0x50] sm:$0xf] %vm1920_vm15, %v2185_v43  ;;  %v2188_v35 = vpack.c.bf16 %v2245_v51, %v2245_v51  ;;  %v1750_v1 = vsel %vm1161_vm7, %v1699_v60, 0.0  ;;  %v1702_v8 = vmul.f32 %v2245_v51, %v2245_v51  ;;  %v1655_v13 = vsel %vm1161_vm7, %v2245_v51, 0.0 }
 0x21d   : > { %v1566_v54 = vpop.f32.mrf.mxu1  ;;  %v1751_v40 = vadd.f32 %v1750_v1, %v1749_v29 }
 0x21e   : > { %1944 = vst.msk [vmem:[%s3107_s11 + $0x5c] sm:$0xf] %vm1920_vm15, %v2188_v35  ;;  %v2186_v7 = vpack.c.bf16 %v1566_v54, %v1566_v54  ;;  %v1700_v11 = vmul.f32 %v1566_v54, %v1566_v54  ;;  %v1651_v2 = vsel %vm1161_vm7, %v1566_v54, 0.0  ;;  %v1756_v14 = vsel %vm1161_vm7, %v1702_v8, 0.0 }
 0x21f   : > { %v1652_v52 = vadd.f32 %v1651_v2, %v1650_v3 }
 0x220   : > { %1942 = vst.msk [vmem:[%s3107_s11 + $0x54] sm:$0xf] %vm1920_vm15, %v2186_v7  ;;  %v1752_v62 = vsel %vm1161_vm7, %v1700_v11, 0.0 }
 0x221   : > { %v1753_v59 = vadd.f32 %v1752_v62, %v1751_v40  ;;  %v1654_v5 = vadd.f32 %v1653_v63, %v1652_v52 }
 0x223   : > { %v1755_v12 = vadd.f32 %v1754_v6, %v1753_v59  ;;  %v1656_v15 = vadd.f32 %v1655_v13, %v1654_v5 }
 0x225   : > { %v1757_v20 = vadd.f32 %v1756_v14, %v1755_v12  ;;  %v1788_v12 = vld [vmem:[%s3197_s13] sm:$0x3] }
 0x237   : > { %v2248_v48 = vpop.f32.mrf.mxu1 }
 0x238   : > { %v2191_v55 = vpack.c.bf16 %v2248_v48, %v2248_v48  ;;  %v1705_v23 = vmul.f32 %v2248_v48, %v2248_v48  ;;  %v1661_v32 = vsel %vm1161_vm7, %v2248_v48, 0.0 }
 0x239   : > { %v1579_v21 = vpop.f32.mrf.mxu1 }
 0x23a   : > { %1947 = vst.msk [vmem:[%s3107_s11 + $0x68] sm:$0xf] %vm1920_vm15, %v2191_v55  ;;  %v2189_v56 = vpack.c.bf16 %v1579_v21, %v1579_v21  ;;  %v1703_v9 = vmul.f32 %v1579_v21, %v1579_v21  ;;  %v1657_v16 = vsel %vm1161_vm7, %v1579_v21, 0.0  ;;  %v1762_v18 = vsel %vm1161_vm7, %v1705_v23, 0.0 }
 0x23b   : > { %v2249_v53 = vpop.f32.mrf.mxu1  ;;  %v1658_v22 = vadd.f32 %v1657_v16, %v1656_v15 }
 0x23c   : > { %1945 = vst.msk [vmem:[%s3107_s11 + $0x60] sm:$0xf] %vm1920_vm15, %v2189_v56  ;;  %v2192_v57 = vpack.c.bf16 %v2249_v53, %v2249_v53  ;;  %v1758_v44 = vsel %vm1161_vm7, %v1703_v9, 0.0  ;;  %v1706_v37 = vmul.f32 %v2249_v53, %v2249_v53  ;;  %v1663_v42 = vsel %vm1161_vm7, %v2249_v53, 0.0 }
 0x23d   : > { %v1582_v61 = vpop.f32.mrf.mxu1  ;;  %v1759_v25 = vadd.f32 %v1758_v44, %v1757_v20 }
 0x23e   : > { %1948 = vst.msk [vmem:[%s3107_s11 + $0x6c] sm:$0xf] %vm1920_vm15, %v2192_v57  ;;  %v2190_v28 = vpack.c.bf16 %v1582_v61, %v1582_v61  ;;  %v1704_v4 = vmul.f32 %v1582_v61, %v1582_v61  ;;  %v1659_v10 = vsel %vm1161_vm7, %v1582_v61, 0.0  ;;  %v1764_v30 = vsel %vm1161_vm7, %v1706_v37, 0.0 }
 0x23f   : > { %v1660_v27 = vadd.f32 %v1659_v10, %v1658_v22 }
 0x240   : > { %1946 = vst.msk [vmem:[%s3107_s11 + $0x64] sm:$0xf] %vm1920_vm15, %v2190_v28  ;;  %v1760_v34 = vsel %vm1161_vm7, %v1704_v4, 0.0 }
 0x241   : > { %v1761_v31 = vadd.f32 %v1760_v34, %v1759_v25  ;;  %v1662_v58 = vadd.f32 %v1661_v32, %v1660_v27 }
 0x243   : > { %v1763_v19 = vadd.f32 %v1762_v18, %v1761_v31  ;;  %v1664_v46 = vadd.f32 %v1663_v42, %v1662_v58 }
 0x245   : > { %v1765_v49 = vadd.f32 %v1764_v30, %v1763_v19 }
 0x254   : > { %v2252_v24 = vpop.f32.mrf.mxu1 }
 0x255   : > { %v2195_v38 = vpack.c.bf16 %v2252_v24, %v2252_v24  ;;  %v1709_v43 = vmul.f32 %v2252_v24, %v2252_v24  ;;  %v1669_v55 = vsel %vm1161_vm7, %v2252_v24, 0.0 }
 0x256   : > { %v1595_v41 = vpop.f32.mrf.mxu1 }
 0x257   : > { %1951 = vst.msk [vmem:[%s3107_s11 + $0x78] sm:$0xf] %vm1920_vm15, %v2195_v38  ;;  %v1665_v36 = vsel %vm1161_vm7, %v1595_v41, 0.0  ;;  %v1707_v26 = vmul.f32 %v1595_v41, %v1595_v41  ;;  %v2193_v39 = vpack.c.bf16 %v1595_v41, %v1595_v41  ;;  %v1770_v60 = vsel %vm1161_vm7, %v1709_v43, 0.0 }
 0x258   : > { %v2253_v47 = vpop.f32.mrf.mxu1  ;;  %v1666_v45 = vadd.f32 %v1665_v36, %v1664_v46 }
 0x259   : > { %v1766_v33 = vsel %vm1161_vm7, %v1707_v26, 0.0  ;;  %1949 = vst.msk [vmem:[%s3107_s11 + $0x70] sm:$0xf] %vm1920_vm15, %v2193_v39  ;;  %v2196_v29 = vpack.c.bf16 %v2253_v47, %v2253_v47  ;;  %v1710_v21 = vmul.f32 %v2253_v47, %v2253_v47  ;;  %v1671_v61 = vsel %vm1161_vm7, %v2253_v47, 0.0 }
 0x25a   : > { %v1598_v50 = vpop.f32.mrf.mxu1  ;;  %v1767_v7 = vadd.f32 %v1766_v33, %v1765_v49 }
 0x25b   : > { %1952 = vst.msk [vmem:[%s3107_s11 + $0x7c] sm:$0xf] %vm1920_vm15, %v2196_v29  ;;  %v1667_v51 = vsel %vm1161_vm7, %v1598_v50, 0.0  ;;  %v1708_v35 = vmul.f32 %v1598_v50, %v1598_v50  ;;  %v2194_v54 = vpack.c.bf16 %v1598_v50, %v1598_v50  ;;  %v1772_v11 = vsel %vm1161_vm7, %v1710_v21, 0.0 }
 0x25c   : > { %v1668_v48 = vadd.f32 %v1667_v51, %v1666_v45 }
 0x25d   : > { %v1768_v56 = vsel %vm1161_vm7, %v1708_v35, 0.0  ;;  %1950 = vst.msk [vmem:[%s3107_s11 + $0x74] sm:$0xf] %vm1920_vm15, %v2194_v54 }
 0x25e   : > { %v1670_v53 = vadd.f32 %v1669_v55, %v1668_v48  ;;  %v1769_v57 = vadd.f32 %v1768_v56, %v1767_v7 }
 0x260   : > { %v1672_v28 = vadd.f32 %v1671_v61, %v1670_v53  ;;  %v1771_v0 = vadd.f32 %v1770_v60, %v1769_v57 }
 0x262   : > { %v1673_v1 = vrot.slane %v1672_v28, 4  ;;  %v1773_v2 = vadd.f32 %v1772_v11, %v1771_v0 }
 0x264   : > { %v1674_v3 = vadd.f32 %v1673_v1, %v1672_v28  ;;  %v1774_v62 = vrot.slane %v1773_v2, 4 }
 0x266   : > { %v1675_v40 = vrot.slane %v1674_v3, 2  ;;  %v1775_v52 = vadd.f32 %v1774_v62, %v1773_v2 }
 0x268   : > { %v1676_v17 = vadd.f32 %v1675_v40, %v1674_v3  ;;  %v1776_v59 = vrot.slane %v1775_v52, 2 }
 0x26a   : > { %v1677_v63 = vrot.slane %v1676_v17, 1  ;;  %v1777_v5 = vadd.f32 %v1776_v59, %v1775_v52 }
 0x26c   : > { %v1778_v6 = vrot.slane %v1777_v5, 1  ;;  %v1678_v8 = vadd.f32 %v1677_v63, %v1676_v17 }
 0x26e   : > { %v1779_v9 = vadd.f32 %v1778_v6, %v1777_v5 }
 0x270   : > { %v1781_v13 = vsel %vm525_vm0, %v1678_v8, %v1779_v9 }
 0x271   : > { %v1789_v16 = vadd.f32 %v1788_v12, %v1781_v13 }
 0x273   : > { %1791 = vst.msk [vmem:[%s3197_s13] sm:$0x3] %vm1786_vm1, %v1789_v16 }
 0x274   : > { %2342 = shalt.err (!%p2339_p5)
}
 0x275   : > { %s2343_s7 = scalar_lea.hbm %s1979_s3, 32  ;;  %s2347_s10 = scalar_lea.hbm %s3315_s5, 64 }
 0x276   : > { %p2344_p6 = scmp.ne.s32.totalorder %s1979_s3, %s2343_s7  ;;  %p2348_p10 = scmp.lt.s32.totalorder %s1979_s3, %s3315_s5 }
 0x277   : > { %p2349_p11 = scmp.lt.s32.totalorder %s2347_s10, %s2343_s7 }
 0x278   : > { %p2345_p7 = pnand %p2344_p6, %p2487_p4 }
 0x279   : > { %p2350_p12 = por %p2349_p11, %p2348_p10 }
 0x27a   : > { %p2346_p9 = pneg %p2345_p7 }
 0x27c   : > { %p2351_p13 = pnand %p2350_p12, %p2346_p9 }
 0x27e   : > { %2354 = shalt.err (!%p2351_p13)
}
 0x27f   : > { %2262 = dma.vmem_to_hbm [thread:$0]  (%p2487_p4), %s1982_s15, 32, %s1979_s3, %s1964_s23  }
 0x280 PF: > { %p2268_p0 = scmp.ge.s32.totalorder %s2405_s22, 2  ;;  %s2006_s12 = sand.u32 1, %s2385_s18  }
 0x281   : > { %s2007_s13 = scalar_lea.sflag [#allocation3], %s2006_s12 }
 0x282   : > { %p2265_p1 = pnand %p2268_p0, %p2494_p8 }
 0x284   : > { %p2266_p2 = pneg %p2265_p1 }
 0x286   : > { %2380 = dma.done.wait (%p2266_p2), %s2007_s13, 32  }
 0x287   : > { %2382 = vsyncadd (%p2266_p2), %s2007_s13, 4294967264  ;;  %s19_s22 = sadd.s32 1, %s2405_s22   ;;  %s3320_s18 = smov %s2389_s19 }
 0x288   : > { %p16_p3 = scmp.ge.s32.totalorder %s19_s22, 4   ;;  %s3321_s19 = smov %s2393_s20 }
 0x289   : > { %s3322_s20 = smov %s2500_s29  ;;  %s3323_s21 = smov %s2401_s2 }
 0x28a   : > { %s3324_s2 = smov %s3326_s24  ;;  %18 = sbr.rel (!%p16_p3) target bundleno = 4 (0x4), region = 90 }
 0x28f   :  { %2012 = vsyncpa [#allocation3], 1 }
 0x290   :  { %2014 = vsyncpa [#allocation3 + $0x1], 1 }

</bundles_post_ra>
